<compile_context>
chip_gen: v7x
topology: tpu7x:2x2x1
jax: 0.10.0
libtpu: 0.0.40
codegen_flags: <defaults>
</compile_context>

<pallas_src>
import functools

import jax
import jax.numpy as jnp
from jax.experimental import pallas as pl
from jax.experimental.pallas import tpu as pltpu


def _round_up(v, m):
    return (v + m - 1) // m * m


# ---------------- fused Pallas kernel ----------------

def _make_fused_kernel(c_in, c_out, q1, wp):
    """conv3x3(pad=1)+bias+ReLU -> flatten -> linear; one sample per grid step."""
    tap_offsets = [dy * wp + dx for dy in range(3) for dx in range(3)]

    def kernel(xf_ref, wc_ref, bc_ref, wl_ref, bl_ref, o_ref):
        # xf_ref: (1, c_in, xlen)  zero-padded, flattened padded-grid image
        # wc_ref: (9, c_out, c_in) conv taps
        # bc_ref: (c_out, 1)       conv bias
        # wl_ref: (c_out, q1, kp)  classifier weight (padded-grid order, 0 at pads)
        # bl_ref: (1, kp)          classifier bias (lane padded)
        # o_ref : (1, 1, kp)       logits for this sample (padded classes)

        # conv = 9 accumulating matmuls over shifted windows (in-VMEM im2col).
        acc = jnp.zeros((c_out, q1), jnp.float32)
        for t, off in enumerate(tap_offsets):
            x_tap = xf_ref[0, :, off:off + q1]                    # (c_in, q1)
            acc = acc + jnp.dot(wc_ref[t], x_tap,
                                preferred_element_type=jnp.float32)
        feat = jnp.maximum(acc + bc_ref[...], 0.0)                # (c_out, q1)

        # classifier: contract (c_out, q1) against the permuted weight.
        out = bl_ref[...]                                         # (1, kp)
        for c in range(c_out):
            out = out + jnp.dot(feat[c:c + 1, :], wl_ref[c],
                                preferred_element_type=jnp.float32)
        o_ref[0, :, :] = out

    return kernel


# ---------------- parameter handling ----------------

def init_params(key, c_in, c_out, h, w, num_classes):
    """Parameters in PyTorch layout (Conv2d [Cout,Cin,3,3], Linear [K,F])."""
    k1, k2, k3, k4 = jax.random.split(key, 4)
    conv_w = jax.random.normal(k1, (c_out, c_in, 3, 3), jnp.float32) * 0.1
    conv_b = jax.random.normal(k2, (c_out,), jnp.float32) * 0.1
    feat_dim = c_out * h * w
    lin_w = jax.random.normal(k3, (num_classes, feat_dim), jnp.float32) * 0.02
    lin_b = jax.random.normal(k4, (num_classes,), jnp.float32) * 0.02
    return dict(conv_w=conv_w, conv_b=conv_b, lin_w=lin_w, lin_b=lin_b)


def prepare_params(params, h, w, num_classes, kp=128):
    """One-time conversion of PyTorch-layout params to kernel-ready layouts."""
    conv_w, conv_b = params["conv_w"], params["conv_b"]   # [Cout,Cin,3,3], [Cout]
    lin_w, lin_b = params["lin_w"], params["lin_b"]       # [K, Cout*H*W], [K]
    c_out, c_in, kh, kw = conv_w.shape
    hp, wp = h + 2, w + 2
    q1 = hp * wp
    kp = _round_up(max(kp, num_classes), 128)

    # Conv taps: wck[dy*3+dx, cout, cin] = conv_w[cout, cin, dy, dx]
    wck = jnp.transpose(conv_w, (2, 3, 0, 1)).reshape(kh * kw, c_out, c_in)
    bck = conv_b.reshape(c_out, 1)

    # Classifier weight permuted to the kernel's [cout, y*Wp+x] feature order
    # (this absorbs PyTorch's NCHW flatten); zero at spatial-pad positions and
    # padded class lanes so garbage conv columns contribute nothing.
    w4 = lin_w.reshape(num_classes, c_out, h, w)
    w4 = jnp.transpose(w4, (1, 2, 3, 0))                          # [Cout,H,W,K]
    w4 = jnp.pad(w4, ((0, 0), (0, hp - h), (0, wp - w), (0, kp - num_classes)))
    wlp = w4.reshape(c_out, q1, kp)
    blp = jnp.pad(lin_b, (0, kp - num_classes)).reshape(1, kp)
    return dict(wck=wck, bck=bck, wlp=wlp, blp=blp)


# ---------------- forward ----------------

@functools.partial(jax.jit, static_argnames=("num_classes",))
def vision_model_forward(x_nchw, kparams, *, num_classes):
    """x_nchw: [N, C_in, H, W] float32 -> logits [N, num_classes] float32."""
    n, c_in, h, w = x_nchw.shape
    wck, bck = kparams["wck"], kparams["bck"]
    wlp, blp = kparams["wlp"], kparams["blp"]
    c_out = wck.shape[1]
    hp, wp = h + 2, w + 2
    q1 = hp * wp
    kp = wlp.shape[-1]
    assert wlp.shape == (c_out, q1, kp)

    # Pack the input once: zero-pad spatially, flatten the padded grid, and add
    # lane slack so every 3x3 tap is an in-bounds shifted slice in-kernel.
    xlen = _round_up(q1 + 2 * wp + 2, 128)
    xp = jnp.pad(x_nchw, ((0, 0), (0, 0), (1, 1), (1, 1)))        # [N,Cin,Hp,Wp]
    xf = jnp.pad(xp.reshape(n, c_in, q1), ((0, 0), (0, 0), (0, xlen - q1)))

    kernel = _make_fused_kernel(c_in, c_out, q1, wp)

    flops = n * (2 * 9 * c_out * c_in * q1 + 2 * c_out * q1 * kp)
    bytes_accessed = 4 * (xf.size + wck.size + bck.size + wlp.size + blp.size
                          + n * kp)

    out = pl.pallas_call(
        kernel,
        out_shape=jax.ShapeDtypeStruct((n, 1, kp), jnp.float32),
        grid=(n,),
        in_specs=[
            pl.BlockSpec((1, c_in, xlen), lambda b: (b, 0, 0)),   # per-sample image
            pl.BlockSpec((9, c_out, c_in), lambda b: (0, 0, 0)),  # conv taps
            pl.BlockSpec((c_out, 1), lambda b: (0, 0)),           # conv bias
            pl.BlockSpec((c_out, q1, kp), lambda b: (0, 0, 0)),   # classifier W
            pl.BlockSpec((1, kp), lambda b: (0, 0)),              # classifier b
        ],
        out_specs=pl.BlockSpec((1, 1, kp), lambda b: (b, 0, 0)),
        compiler_params=pltpu.CompilerParams(
            dimension_semantics=("parallel",)),                   # 2 TCs on v7x
        cost_estimate=pl.CostEstimate(flops=flops, transcendentals=0,
                                      bytes_accessed=bytes_accessed),
    )(xf, wck, bck, wlp, blp)

    return out[:, 0, :num_classes]


# ---------------- pure-JAX reference (for validation only) ----------------

def _reference_forward(x_nchw, params):
    conv = jax.lax.conv_general_dilated(
        x_nchw, params["conv_w"], window_strides=(1, 1),
        padding=((1, 1), (1, 1)),
        dimension_numbers=("NCHW", "OIHW", "NCHW"))
    feat = jnp.maximum(conv + params["conv_b"][None, :, None, None], 0.0)
    flat = feat.reshape(x_nchw.shape[0], -1)
    return flat @ params["lin_w"].T + params["lin_b"]


if __name__ == "__main__":
    N, C_in, H, W = 2, 4, 16, 16
    C_out, num_classes = 8, 10

    key = jax.random.PRNGKey(0)
    kx, kparam = jax.random.split(key)
    x = jax.random.normal(kx, (N, C_in, H, W), jnp.float32)
    params = init_params(kparam, C_in, C_out, H, W, num_classes)
    kparams = prepare_params(params, H, W, num_classes)   # one-time re-layout

    logits = vision_model_forward(x, kparams, num_classes=num_classes)
    jax.block_until_ready(logits)
    assert logits.shape == (N, num_classes)

    ref = _reference_forward(x, params)
    err = float(jnp.max(jnp.abs(logits - ref)))
    assert jnp.allclose(logits, ref, rtol=1e-4, atol=1e-4), f"max err {err}"

    # TODO(synk): freeze_features/unfreeze_features are training-time
    # requires_grad toggles with no inference-kernel equivalent.
    print("KERNEL_OK")
</pallas_src>

<mosaic_0001>
module attributes {stable_mosaic.version = 11 : i64} {
  func.func @kernel(%arg0: i32, %arg1: memref<1x4x384xf32, #tpu.memory_space<vmem>>, %arg2: memref<9x8x4xf32, #tpu.memory_space<vmem>>, %arg3: memref<8x1xf32, #tpu.memory_space<vmem>>, %arg4: memref<8x324x128xf32, #tpu.memory_space<vmem>>, %arg5: memref<1x128xf32, #tpu.memory_space<vmem>>, %arg6: memref<1x1x128xf32, #tpu.memory_space<vmem>>) attributes {dimension_semantics = [#tpu.dimension_semantics<parallel>], iteration_bounds = array<i64: 2>, scalar_prefetch = 0 : i64, scratch_operands = 0 : i64, tpu.core_type = #tpu.core_type<tc>, window_params = [{transform_indices = @transform_0, window_bounds = array<i64: 1, 4, 384>}, {pipeline_mode = #tpu.pipeline_mode<synchronous>, transform_indices = @transform_1, window_bounds = array<i64: 9, 8, 4>}, {pipeline_mode = #tpu.pipeline_mode<synchronous>, transform_indices = @transform_2, window_bounds = array<i64: 8, 1>}, {pipeline_mode = #tpu.pipeline_mode<synchronous>, transform_indices = @transform_3, window_bounds = array<i64: 8, 324, 128>}, {pipeline_mode = #tpu.pipeline_mode<synchronous>, transform_indices = @transform_4, window_bounds = array<i64: 1, 128>}, {transform_indices = @transform_5, window_bounds = array<i64: 1, 1, 128>}]} {
    %cst = arith.constant 0.000000e+00 : f32
    %0 = vector.broadcast %cst : f32 to vector<8x324xf32>
    %c0 = arith.constant 0 : index
    %c0_0 = arith.constant 0 : index
    %c0_1 = arith.constant 0 : index
    %1 = vector.load %arg1[%c0, %c0_0, %c0_1] : memref<1x4x384xf32, #tpu.memory_space<vmem>>, vector<1x4x324xf32>
    %2 = vector.shape_cast %1 : vector<1x4x324xf32> to vector<4x324xf32>
    %c0_2 = arith.constant 0 : index
    %c0_3 = arith.constant 0 : index
    %c0_4 = arith.constant 0 : index
    %3 = vector.load %arg2[%c0_2, %c0_3, %c0_4] : memref<9x8x4xf32, #tpu.memory_space<vmem>>, vector<1x8x4xf32>
    %4 = vector.shape_cast %3 : vector<1x8x4xf32> to vector<8x4xf32>
    %cst_5 = arith.constant dense<0.000000e+00> : vector<8x324xf32>
    %5 = tpu.matmul %4, %2, %cst_5 {dimension_numbers = #tpu.dot_dimension_numbers<[1], [0], [0], [1], [0, 0, 1, 1], [], []>} : vector<8x4xf32>, vector<4x324xf32>, vector<8x324xf32> -> vector<8x324xf32>
    %6 = arith.addf %0, %5 : vector<8x324xf32>
    %c0_6 = arith.constant 0 : index
    %c0_7 = arith.constant 0 : index
    %c1 = arith.constant 1 : index
    %7 = vector.load %arg1[%c0_6, %c0_7, %c1] : memref<1x4x384xf32, #tpu.memory_space<vmem>>, vector<1x4x324xf32>
    %8 = vector.shape_cast %7 : vector<1x4x324xf32> to vector<4x324xf32>
    %c1_8 = arith.constant 1 : index
    %c0_9 = arith.constant 0 : index
    %c0_10 = arith.constant 0 : index
    %9 = vector.load %arg2[%c1_8, %c0_9, %c0_10] : memref<9x8x4xf32, #tpu.memory_space<vmem>>, vector<1x8x4xf32>
    %10 = vector.shape_cast %9 : vector<1x8x4xf32> to vector<8x4xf32>
    %cst_11 = arith.constant dense<0.000000e+00> : vector<8x324xf32>
    %11 = tpu.matmul %10, %8, %cst_11 {dimension_numbers = #tpu.dot_dimension_numbers<[1], [0], [0], [1], [0, 0, 1, 1], [], []>} : vector<8x4xf32>, vector<4x324xf32>, vector<8x324xf32> -> vector<8x324xf32>
    %12 = arith.addf %6, %11 : vector<8x324xf32>
    %c0_12 = arith.constant 0 : index
    %c0_13 = arith.constant 0 : index
    %c2 = arith.constant 2 : index
    %13 = vector.load %arg1[%c0_12, %c0_13, %c2] : memref<1x4x384xf32, #tpu.memory_space<vmem>>, vector<1x4x324xf32>
    %14 = vector.shape_cast %13 : vector<1x4x324xf32> to vector<4x324xf32>
    %c2_14 = arith.constant 2 : index
    %c0_15 = arith.constant 0 : index
    %c0_16 = arith.constant 0 : index
    %15 = vector.load %arg2[%c2_14, %c0_15, %c0_16] : memref<9x8x4xf32, #tpu.memory_space<vmem>>, vector<1x8x4xf32>
    %16 = vector.shape_cast %15 : vector<1x8x4xf32> to vector<8x4xf32>
    %cst_17 = arith.constant dense<0.000000e+00> : vector<8x324xf32>
    %17 = tpu.matmul %16, %14, %cst_17 {dimension_numbers = #tpu.dot_dimension_numbers<[1], [0], [0], [1], [0, 0, 1, 1], [], []>} : vector<8x4xf32>, vector<4x324xf32>, vector<8x324xf32> -> vector<8x324xf32>
    %18 = arith.addf %12, %17 : vector<8x324xf32>
    %c0_18 = arith.constant 0 : index
    %c0_19 = arith.constant 0 : index
    %c18 = arith.constant 18 : index
    %19 = vector.load %arg1[%c0_18, %c0_19, %c18] : memref<1x4x384xf32, #tpu.memory_space<vmem>>, vector<1x4x324xf32>
    %20 = vector.shape_cast %19 : vector<1x4x324xf32> to vector<4x324xf32>
    %c3 = arith.constant 3 : index
    %c0_20 = arith.constant 0 : index
    %c0_21 = arith.constant 0 : index
    %21 = vector.load %arg2[%c3, %c0_20, %c0_21] : memref<9x8x4xf32, #tpu.memory_space<vmem>>, vector<1x8x4xf32>
    %22 = vector.shape_cast %21 : vector<1x8x4xf32> to vector<8x4xf32>
    %cst_22 = arith.constant dense<0.000000e+00> : vector<8x324xf32>
    %23 = tpu.matmul %22, %20, %cst_22 {dimension_numbers = #tpu.dot_dimension_numbers<[1], [0], [0], [1], [0, 0, 1, 1], [], []>} : vector<8x4xf32>, vector<4x324xf32>, vector<8x324xf32> -> vector<8x324xf32>
    %24 = arith.addf %18, %23 : vector<8x324xf32>
    %c0_23 = arith.constant 0 : index
    %c0_24 = arith.constant 0 : index
    %c19 = arith.constant 19 : index
    %25 = vector.load %arg1[%c0_23, %c0_24, %c19] : memref<1x4x384xf32, #tpu.memory_space<vmem>>, vector<1x4x324xf32>
    %26 = vector.shape_cast %25 : vector<1x4x324xf32> to vector<4x324xf32>
    %c4 = arith.constant 4 : index
    %c0_25 = arith.constant 0 : index
    %c0_26 = arith.constant 0 : index
    %27 = vector.load %arg2[%c4, %c0_25, %c0_26] : memref<9x8x4xf32, #tpu.memory_space<vmem>>, vector<1x8x4xf32>
    %28 = vector.shape_cast %27 : vector<1x8x4xf32> to vector<8x4xf32>
    %cst_27 = arith.constant dense<0.000000e+00> : vector<8x324xf32>
    %29 = tpu.matmul %28, %26, %cst_27 {dimension_numbers = #tpu.dot_dimension_numbers<[1], [0], [0], [1], [0, 0, 1, 1], [], []>} : vector<8x4xf32>, vector<4x324xf32>, vector<8x324xf32> -> vector<8x324xf32>
    %30 = arith.addf %24, %29 : vector<8x324xf32>
    %c0_28 = arith.constant 0 : index
    %c0_29 = arith.constant 0 : index
    %c20 = arith.constant 20 : index
    %31 = vector.load %arg1[%c0_28, %c0_29, %c20] : memref<1x4x384xf32, #tpu.memory_space<vmem>>, vector<1x4x324xf32>
    %32 = vector.shape_cast %31 : vector<1x4x324xf32> to vector<4x324xf32>
    %c5 = arith.constant 5 : index
    %c0_30 = arith.constant 0 : index
    %c0_31 = arith.constant 0 : index
    %33 = vector.load %arg2[%c5, %c0_30, %c0_31] : memref<9x8x4xf32, #tpu.memory_space<vmem>>, vector<1x8x4xf32>
    %34 = vector.shape_cast %33 : vector<1x8x4xf32> to vector<8x4xf32>
    %cst_32 = arith.constant dense<0.000000e+00> : vector<8x324xf32>
    %35 = tpu.matmul %34, %32, %cst_32 {dimension_numbers = #tpu.dot_dimension_numbers<[1], [0], [0], [1], [0, 0, 1, 1], [], []>} : vector<8x4xf32>, vector<4x324xf32>, vector<8x324xf32> -> vector<8x324xf32>
    %36 = arith.addf %30, %35 : vector<8x324xf32>
    %c0_33 = arith.constant 0 : index
    %c0_34 = arith.constant 0 : index
    %c36 = arith.constant 36 : index
    %37 = vector.load %arg1[%c0_33, %c0_34, %c36] : memref<1x4x384xf32, #tpu.memory_space<vmem>>, vector<1x4x324xf32>
    %38 = vector.shape_cast %37 : vector<1x4x324xf32> to vector<4x324xf32>
    %c6 = arith.constant 6 : index
    %c0_35 = arith.constant 0 : index
    %c0_36 = arith.constant 0 : index
    %39 = vector.load %arg2[%c6, %c0_35, %c0_36] : memref<9x8x4xf32, #tpu.memory_space<vmem>>, vector<1x8x4xf32>
    %40 = vector.shape_cast %39 : vector<1x8x4xf32> to vector<8x4xf32>
    %cst_37 = arith.constant dense<0.000000e+00> : vector<8x324xf32>
    %41 = tpu.matmul %40, %38, %cst_37 {dimension_numbers = #tpu.dot_dimension_numbers<[1], [0], [0], [1], [0, 0, 1, 1], [], []>} : vector<8x4xf32>, vector<4x324xf32>, vector<8x324xf32> -> vector<8x324xf32>
    %42 = arith.addf %36, %41 : vector<8x324xf32>
    %c0_38 = arith.constant 0 : index
    %c0_39 = arith.constant 0 : index
    %c37 = arith.constant 37 : index
    %43 = vector.load %arg1[%c0_38, %c0_39, %c37] : memref<1x4x384xf32, #tpu.memory_space<vmem>>, vector<1x4x324xf32>
    %44 = vector.shape_cast %43 : vector<1x4x324xf32> to vector<4x324xf32>
    %c7 = arith.constant 7 : index
    %c0_40 = arith.constant 0 : index
    %c0_41 = arith.constant 0 : index
    %45 = vector.load %arg2[%c7, %c0_40, %c0_41] : memref<9x8x4xf32, #tpu.memory_space<vmem>>, vector<1x8x4xf32>
    %46 = vector.shape_cast %45 : vector<1x8x4xf32> to vector<8x4xf32>
    %cst_42 = arith.constant dense<0.000000e+00> : vector<8x324xf32>
    %47 = tpu.matmul %46, %44, %cst_42 {dimension_numbers = #tpu.dot_dimension_numbers<[1], [0], [0], [1], [0, 0, 1, 1], [], []>} : vector<8x4xf32>, vector<4x324xf32>, vector<8x324xf32> -> vector<8x324xf32>
    %48 = arith.addf %42, %47 : vector<8x324xf32>
    %c0_43 = arith.constant 0 : index
    %c0_44 = arith.constant 0 : index
    %c38 = arith.constant 38 : index
    %49 = vector.load %arg1[%c0_43, %c0_44, %c38] : memref<1x4x384xf32, #tpu.memory_space<vmem>>, vector<1x4x324xf32>
    %50 = vector.shape_cast %49 : vector<1x4x324xf32> to vector<4x324xf32>
    %c8 = arith.constant 8 : index
    %c0_45 = arith.constant 0 : index
    %c0_46 = arith.constant 0 : index
    %51 = vector.load %arg2[%c8, %c0_45, %c0_46] : memref<9x8x4xf32, #tpu.memory_space<vmem>>, vector<1x8x4xf32>
    %52 = vector.shape_cast %51 : vector<1x8x4xf32> to vector<8x4xf32>
    %cst_47 = arith.constant dense<0.000000e+00> : vector<8x324xf32>
    %53 = tpu.matmul %52, %50, %cst_47 {dimension_numbers = #tpu.dot_dimension_numbers<[1], [0], [0], [1], [0, 0, 1, 1], [], []>} : vector<8x4xf32>, vector<4x324xf32>, vector<8x324xf32> -> vector<8x324xf32>
    %54 = arith.addf %48, %53 : vector<8x324xf32>
    %c0_48 = arith.constant 0 : index
    %c0_49 = arith.constant 0 : index
    %55 = vector.load %arg3[%c0_48, %c0_49] : memref<8x1xf32, #tpu.memory_space<vmem>>, vector<8x1xf32>
    %56 = vector.broadcast %55 : vector<8x1xf32> to vector<8x324xf32>
    %57 = arith.addf %54, %56 : vector<8x324xf32>
    %cst_50 = arith.constant 0.000000e+00 : f32
    %58 = vector.broadcast %cst_50 : f32 to vector<8x324xf32>
    %59 = arith.maximumf %57, %58 : vector<8x324xf32>
    %c0_51 = arith.constant 0 : index
    %c0_52 = arith.constant 0 : index
    %60 = vector.load %arg5[%c0_51, %c0_52] : memref<1x128xf32, #tpu.memory_space<vmem>>, vector<1x128xf32>
    %61 = vector.extract_strided_slice %59 {offsets = [0, 0], sizes = [1, 324], strides = [1, 1]} : vector<8x324xf32> to vector<1x324xf32>
    %c0_53 = arith.constant 0 : index
    %c0_54 = arith.constant 0 : index
    %c0_55 = arith.constant 0 : index
    %62 = vector.load %arg4[%c0_53, %c0_54, %c0_55] : memref<8x324x128xf32, #tpu.memory_space<vmem>>, vector<1x324x128xf32>
    %63 = vector.shape_cast %62 : vector<1x324x128xf32> to vector<324x128xf32>
    %cst_56 = arith.constant dense<0.000000e+00> : vector<1x128xf32>
    %64 = tpu.matmul %61, %63, %cst_56 {dimension_numbers = #tpu.dot_dimension_numbers<[1], [0], [0], [1], [0, 0, 1, 1], [], []>} : vector<1x324xf32>, vector<324x128xf32>, vector<1x128xf32> -> vector<1x128xf32>
    %65 = arith.addf %60, %64 : vector<1x128xf32>
    %66 = vector.extract_strided_slice %59 {offsets = [1, 0], sizes = [1, 324], strides = [1, 1]} : vector<8x324xf32> to vector<1x324xf32>
    %c1_57 = arith.constant 1 : index
    %c0_58 = arith.constant 0 : index
    %c0_59 = arith.constant 0 : index
    %67 = vector.load %arg4[%c1_57, %c0_58, %c0_59] : memref<8x324x128xf32, #tpu.memory_space<vmem>>, vector<1x324x128xf32>
    %68 = vector.shape_cast %67 : vector<1x324x128xf32> to vector<324x128xf32>
    %cst_60 = arith.constant dense<0.000000e+00> : vector<1x128xf32>
    %69 = tpu.matmul %66, %68, %cst_60 {dimension_numbers = #tpu.dot_dimension_numbers<[1], [0], [0], [1], [0, 0, 1, 1], [], []>} : vector<1x324xf32>, vector<324x128xf32>, vector<1x128xf32> -> vector<1x128xf32>
    %70 = arith.addf %65, %69 : vector<1x128xf32>
    %71 = vector.extract_strided_slice %59 {offsets = [2, 0], sizes = [1, 324], strides = [1, 1]} : vector<8x324xf32> to vector<1x324xf32>
    %c2_61 = arith.constant 2 : index
    %c0_62 = arith.constant 0 : index
    %c0_63 = arith.constant 0 : index
    %72 = vector.load %arg4[%c2_61, %c0_62, %c0_63] : memref<8x324x128xf32, #tpu.memory_space<vmem>>, vector<1x324x128xf32>
    %73 = vector.shape_cast %72 : vector<1x324x128xf32> to vector<324x128xf32>
    %cst_64 = arith.constant dense<0.000000e+00> : vector<1x128xf32>
    %74 = tpu.matmul %71, %73, %cst_64 {dimension_numbers = #tpu.dot_dimension_numbers<[1], [0], [0], [1], [0, 0, 1, 1], [], []>} : vector<1x324xf32>, vector<324x128xf32>, vector<1x128xf32> -> vector<1x128xf32>
    %75 = arith.addf %70, %74 : vector<1x128xf32>
    %76 = vector.extract_strided_slice %59 {offsets = [3, 0], sizes = [1, 324], strides = [1, 1]} : vector<8x324xf32> to vector<1x324xf32>
    %c3_65 = arith.constant 3 : index
    %c0_66 = arith.constant 0 : index
    %c0_67 = arith.constant 0 : index
    %77 = vector.load %arg4[%c3_65, %c0_66, %c0_67] : memref<8x324x128xf32, #tpu.memory_space<vmem>>, vector<1x324x128xf32>
    %78 = vector.shape_cast %77 : vector<1x324x128xf32> to vector<324x128xf32>
    %cst_68 = arith.constant dense<0.000000e+00> : vector<1x128xf32>
    %79 = tpu.matmul %76, %78, %cst_68 {dimension_numbers = #tpu.dot_dimension_numbers<[1], [0], [0], [1], [0, 0, 1, 1], [], []>} : vector<1x324xf32>, vector<324x128xf32>, vector<1x128xf32> -> vector<1x128xf32>
    %80 = arith.addf %75, %79 : vector<1x128xf32>
    %81 = vector.extract_strided_slice %59 {offsets = [4, 0], sizes = [1, 324], strides = [1, 1]} : vector<8x324xf32> to vector<1x324xf32>
    %c4_69 = arith.constant 4 : index
    %c0_70 = arith.constant 0 : index
    %c0_71 = arith.constant 0 : index
    %82 = vector.load %arg4[%c4_69, %c0_70, %c0_71] : memref<8x324x128xf32, #tpu.memory_space<vmem>>, vector<1x324x128xf32>
    %83 = vector.shape_cast %82 : vector<1x324x128xf32> to vector<324x128xf32>
    %cst_72 = arith.constant dense<0.000000e+00> : vector<1x128xf32>
    %84 = tpu.matmul %81, %83, %cst_72 {dimension_numbers = #tpu.dot_dimension_numbers<[1], [0], [0], [1], [0, 0, 1, 1], [], []>} : vector<1x324xf32>, vector<324x128xf32>, vector<1x128xf32> -> vector<1x128xf32>
    %85 = arith.addf %80, %84 : vector<1x128xf32>
    %86 = vector.extract_strided_slice %59 {offsets = [5, 0], sizes = [1, 324], strides = [1, 1]} : vector<8x324xf32> to vector<1x324xf32>
    %c5_73 = arith.constant 5 : index
    %c0_74 = arith.constant 0 : index
    %c0_75 = arith.constant 0 : index
    %87 = vector.load %arg4[%c5_73, %c0_74, %c0_75] : memref<8x324x128xf32, #tpu.memory_space<vmem>>, vector<1x324x128xf32>
    %88 = vector.shape_cast %87 : vector<1x324x128xf32> to vector<324x128xf32>
    %cst_76 = arith.constant dense<0.000000e+00> : vector<1x128xf32>
    %89 = tpu.matmul %86, %88, %cst_76 {dimension_numbers = #tpu.dot_dimension_numbers<[1], [0], [0], [1], [0, 0, 1, 1], [], []>} : vector<1x324xf32>, vector<324x128xf32>, vector<1x128xf32> -> vector<1x128xf32>
    %90 = arith.addf %85, %89 : vector<1x128xf32>
    %91 = vector.extract_strided_slice %59 {offsets = [6, 0], sizes = [1, 324], strides = [1, 1]} : vector<8x324xf32> to vector<1x324xf32>
    %c6_77 = arith.constant 6 : index
    %c0_78 = arith.constant 0 : index
    %c0_79 = arith.constant 0 : index
    %92 = vector.load %arg4[%c6_77, %c0_78, %c0_79] : memref<8x324x128xf32, #tpu.memory_space<vmem>>, vector<1x324x128xf32>
    %93 = vector.shape_cast %92 : vector<1x324x128xf32> to vector<324x128xf32>
    %cst_80 = arith.constant dense<0.000000e+00> : vector<1x128xf32>
    %94 = tpu.matmul %91, %93, %cst_80 {dimension_numbers = #tpu.dot_dimension_numbers<[1], [0], [0], [1], [0, 0, 1, 1], [], []>} : vector<1x324xf32>, vector<324x128xf32>, vector<1x128xf32> -> vector<1x128xf32>
    %95 = arith.addf %90, %94 : vector<1x128xf32>
    %96 = vector.extract_strided_slice %59 {offsets = [7, 0], sizes = [1, 324], strides = [1, 1]} : vector<8x324xf32> to vector<1x324xf32>
    %c7_81 = arith.constant 7 : index
    %c0_82 = arith.constant 0 : index
    %c0_83 = arith.constant 0 : index
    %97 = vector.load %arg4[%c7_81, %c0_82, %c0_83] : memref<8x324x128xf32, #tpu.memory_space<vmem>>, vector<1x324x128xf32>
    %98 = vector.shape_cast %97 : vector<1x324x128xf32> to vector<324x128xf32>
    %cst_84 = arith.constant dense<0.000000e+00> : vector<1x128xf32>
    %99 = tpu.matmul %96, %98, %cst_84 {dimension_numbers = #tpu.dot_dimension_numbers<[1], [0], [0], [1], [0, 0, 1, 1], [], []>} : vector<1x324xf32>, vector<324x128xf32>, vector<1x128xf32> -> vector<1x128xf32>
    %100 = arith.addf %95, %99 : vector<1x128xf32>
    %c0_85 = arith.constant 0 : index
    %c0_86 = arith.constant 0 : index
    %c0_87 = arith.constant 0 : index
    %101 = vector.load %arg6[%c0_85, %c0_86, %c0_87] : memref<1x1x128xf32, #tpu.memory_space<vmem>>, vector<1x1x128xf32>
    %102 = vector.shape_cast %101 : vector<1x1x128xf32> to vector<1x128xf32>
    %103 = vector.shape_cast %100 : vector<1x128xf32> to vector<1x1x128xf32>
    tpu.vector_store %arg6[%c0_85, %c0_86, %c0_87], %103 {strides = array<i32>} : memref<1x1x128xf32, #tpu.memory_space<vmem>>, vector<1x1x128xf32>,
    return
  }
  func.func @transform_0(%arg0: i32) -> (i32, i32, i32) {
    %c0_i32 = arith.constant 0 : i32
    %c0_i32_0 = arith.constant 0 : i32
    %c0_i32_1 = arith.constant 0 : i32
    return %arg0, %c0_i32, %c0_i32_0 : i32, i32, i32
  }
  func.func @transform_1(%arg0: i32) -> (i32, i32, i32) {
    %c0_i32 = arith.constant 0 : i32
    %c0_i32_0 = arith.constant 0 : i32
    %c0_i32_1 = arith.constant 0 : i32
    %c0_i32_2 = arith.constant 0 : i32
    return %c0_i32, %c0_i32_0, %c0_i32_1 : i32, i32, i32
  }
  func.func @transform_2(%arg0: i32) -> (i32, i32) {
    %c0_i32 = arith.constant 0 : i32
    %c0_i32_0 = arith.constant 0 : i32
    %c0_i32_1 = arith.constant 0 : i32
    return %c0_i32, %c0_i32_0 : i32, i32
  }
  func.func @transform_3(%arg0: i32) -> (i32, i32, i32) {
    %c0_i32 = arith.constant 0 : i32
    %c0_i32_0 = arith.constant 0 : i32
    %c0_i32_1 = arith.constant 0 : i32
    %c0_i32_2 = arith.constant 0 : i32
    return %c0_i32, %c0_i32_0, %c0_i32_1 : i32, i32, i32
  }
  func.func @transform_4(%arg0: i32) -> (i32, i32) {
    %c0_i32 = arith.constant 0 : i32
    %c0_i32_0 = arith.constant 0 : i32
    %c0_i32_1 = arith.constant 0 : i32
    return %c0_i32, %c0_i32_0 : i32, i32
  }
  func.func @transform_5(%arg0: i32) -> (i32, i32, i32) {
    %c0_i32 = arith.constant 0 : i32
    %c0_i32_0 = arith.constant 0 : i32
    %c0_i32_1 = arith.constant 0 : i32
    return %arg0, %c0_i32, %c0_i32_0 : i32, i32, i32
  }
}

</mosaic_0001>

<bundles_post_ra>
// kernel: vision_model_forward.1
= control target key start
LH: loop header
LB: loop body
LE: loop exit
PB: predicated region body
PF: predicated region fallthrough
CT: control target
= control target key end

     0   :  { %10 = vsyncpa [#allocation3], 0  ;;  %s6211_s0 = inlined_call_operand.vmem [shape: f32[2,4,384], index: 0, kind: input, shape index: {}]   ;;  %s6212_s1 = inlined_call_operand.vmem [shape: f32[9,8,4], index: 1, kind: input, shape index: {}]   ;;  %s6213_s2 = inlined_call_operand.vmem [shape: f32[8,1], index: 2, kind: input, shape index: {}]   ;;  %s6214_s3 = inlined_call_operand.vmem [shape: f32[8,324,128], index: 3, kind: input, shape index: {}]   ;;  %s6215_s4 = inlined_call_operand.vmem [shape: f32[1,128], index: 4, kind: input, shape index: {}]   ;;  %s6216_s5 = inlined_call_operand.hbm [shape: f32[2,1,128], index: 5, kind: output, shape index: {}]  }
   0x1   :  { %12 = vsyncpa [#allocation3 + $0x1], 0  ;;  %s4855_s18 = smov 0   ;;  %s4857_s19 = smov 0  }
   0x2   :  { %s4859_s20 = smov 0   ;;  %s4861_s21 = smov 0  }
   0x3 LB: > { %s4876_s22 = sadd.s32 4294967295, %s4810_s21   ;;  %s3348_s23 = sadd.s32 4294967294, %s4810_s21   ;;  %s4810_s21 = sphi %s4861_s21, %s6222_s21   ;;  %s4806_s20 = sphi %s4859_s20, %s6221_s20   ;;  %s4802_s19 = sphi %s4857_s19, %s6220_s19   ;;  %s4798_s18 = sphi %s4855_s18, %s6219_s18  }
   0x4   : > { %s4880_s24 = sadd.s32 1, %s4810_s21   ;;  %s135_s25 = sadd.s32 1, %s4806_s20 }
   0x5   : > { %s132_s26 = ssub.s32 %s4810_s21, %s4880_s24  ;;  %p145_p0 = scmp.ne.s32.totalorder %s4806_s20, %s4802_s19 }
   0x6   : > { %p133_p1 = scmp.eq.s32.totalorder %s132_s26, 0  ;;  %p146_p2 = scmp.eq.s32.totalorder %s4876_s22, 1 }
   0x7   : > { %p151_p3 = scmp.ne.s32.totalorder %s4802_s19, %s4798_s18  ;;  %p152_p4 = scmp.eq.s32.totalorder %s3348_s23, 1 }
   0x8   : > { %s4891_s27 = scalar_select %p133_p1, %s4806_s20, %s135_s25  }
   0x9   : > { %p4893_p5 = por %p146_p2, %p145_p0  ;;  %p4897_p6 = por %p152_p4, %p151_p3 }
   0xa   : > { %p3351_p7 = scmp.ge.s32.totalorder %s4810_s21, 1  ;;  %p190_p8 = scmp.lt.s32.totalorder %s4810_s21, 3 }
   0xc   : > { %p191_p9 = pnand %p3351_p7, %p190_p8 }
   0xd   : > { %p217_p10 = scmp.lt.s32.totalorder (!%p191_p9), %s4876_s22, 1  ;;  %v4812_v0 = vmov (!%p191_p9), 0.0   ;;  %vm4813_vm0 = vmmov (!%p191_p9), 0   ;;  %s4814_s10 = smov (!%p191_p9), 127   ;;  %v1724_v11 = vld [vmem:[%s6213_s2] sm:$0xff] (!%p191_p9)  ;;  %v4822_v12 = vmov (!%p191_p9), 0  }
   0xe   : > { %194 = sbr.rel (%p191_p9) target bundleno = 827 (0x33b), region = 40  ;;  %314 = vmatprep.mubr.f32.mxu0 (!%p191_p9), %v4812_v0  ;;  %4100 = vmatprep.subr.mxu1 (!%p191_p9), %v4812_v0  ;;  %s4815_s11 = smov (!%p191_p9), 126   ;;  %vm236_vm1 = vcmask (!%p191_p9), 1039360   ;;  %vm243_vm2 = vcmask (!%p191_p9), 1043456   ;;  %v3353_v18 = vld [vmem:[%s6212_s1 + $0x8] sm:$0xff] (!%p191_p9)  ;;  %vm239_vm3 = vcmask (!%p191_p9), 31744  }
   0xf   : > { %4102 = vmatprep.mubr.msk.f32.mxu1 (!%p191_p9), %vm4813_vm0, %v4812_v0  ;;  %s4816_s12 = smov (!%p191_p9), 110   ;;  %s4817_s13 = smov (!%p191_p9), 109   ;;  %4746 = vset.pattern.permute.xlu0 (!%p191_p9), %v4822_v12  ;;  %v3364_v21 = vld [vmem:[%s6212_s1 + $0x10] sm:$0xff] (!%p191_p9)  ;;  %v4972_v24 = vld [vmem:[%s6212_s1 + $0x18] sm:$0xff] (!%p191_p9)  ;;  %vm554_vm4 = vcmask (!%p191_p9), 1031168   ;;  %v224_v26 = vld [vmem:[%s6212_s1] sm:$0xff] (!%p191_p9) }
  0x10   : > { %s4818_s14 = smov (!%p191_p9), 108   ;;  %s4819_s15 = smov (!%p191_p9), 92   ;;  %v3376_v29 = vld [vmem:[%s6212_s1 + $0x20] sm:$0xff] (!%p191_p9)  ;;  %vm723_vm5 = vcmask (!%p191_p9), 900096   ;;  %v3382_v34 = vld [vmem:[%s6212_s1 + $0x28] sm:$0xff] (!%p191_p9)  ;;  %vm892_vm6 = vcmask (!%p191_p9), 891904  }
  0x11   : > { %s4820_s16 = smov (!%p191_p9), 91   ;;  %s4821_s17 = smov (!%p191_p9), 90   ;;  %v3388_v39 = vld [vmem:[%s6212_s1 + $0x30] sm:$0xff] (!%p191_p9)  ;;  %v3394_v42 = vld [vmem:[%s6212_s1 + $0x38] sm:$0xff] (!%p191_p9)  ;;  %vm1061_vm7 = vcmask (!%p191_p9), 883712   ;;  %v3400_v47 = vld [vmem:[%s6212_s1 + $0x40] sm:$0xff] (!%p191_p9) }
  0x12   : > { %vm1230_vm8 = vcmask (!%p191_p9), 752640   ;;  %vm1399_vm9 = vcmask (!%p191_p9), 744448   ;;  %vm1568_vm10 = vcmask (!%p191_p9), 736256   ;;  %v1769_v62 = vld [vmem:[%s6214_s3 + $0x100] sm:$0xff] (!%p191_p9)  ;;  %v1770_v63 = vld [vmem:[%s6214_s3 + $0x108] sm:$0xff] (!%p191_p9)  ;;  %vm1778_vm11 = vcmask (!%p191_p9), 556032  }
  0x13   : > { %v1777_v12 = vld [vmem:[%s6214_s3 + $0x140] sm:$0xf] (!%p191_p9)  ;;  %s215_s8 = sand.u32 (!%p191_p9), 1, %s4802_s19  }
  0x15   : > { %s218_s30 = scalar_select %p217_p10, %s4876_s22, 1 }
  0x17   : > { %s4694_s6 = smul.u32 12, %s218_s30 }
  0x19   : > { %s4912_s9 = scalar_lea.vmem %s6211_s0, %s4694_s6 }
  0x1a   : > { %v4915_v1 = vld [vmem:[%s4912_s9] sm:$0xff]  ;;  %v4924_v3 = vld [vmem:[%s4912_s9 + $0x8] sm:$0xf] }
  0x1b   : > { %230 = vrot.lane.b32.xlu1 %v4915_v1, %s4814_s10  ;;  %v4920_v2 = vcombine.high %v4915_v1, %v4915_v1  ;;  %v542_v4 = vld [vmem:[%s4912_s9 + $0x8] sm:$0xf] }
  0x1c   : > { %v711_v5 = vld [vmem:[%s4912_s9 + $0x8] sm:$0xf] }
  0x1d   : > { %232 = vrot.lane.b32.xlu0 %v4920_v2, %s4814_s10  ;;  %v880_v6 = vld [vmem:[%s4912_s9 + $0x8] sm:$0xf] }
  0x1e   : > { %v1049_v7 = vld [vmem:[%s4912_s9 + $0x8] sm:$0xf] }
  0x1f   : > { %550 = vrot.lane.b32.xlu1 %v4920_v2, %s4815_s11  ;;  %v1218_v8 = vld [vmem:[%s4912_s9 + $0x8] sm:$0xf] }
  0x20   : > { %v1387_v9 = vld [vmem:[%s4912_s9 + $0x8] sm:$0xf] }
  0x21   : > { %234 = vrot.lane.b32.xlu0 %v4924_v3, %s4814_s10  ;;  %v1556_v10 = vld [vmem:[%s4912_s9 + $0x8] sm:$0xf]  ;;  %s3709_s9 = sshll.u32 %s4876_s22, 4  ;;  %s216_s10 = scalar_lea.vmem [#allocation2], %s215_s8 }
  0x22   : > { %s4824_s22 = smov [#allocation2]  }
  0x23   : > { %548 = vrot.lane.b32.xlu1 %v4915_v1, %s4815_s11 }
  0x25   : > { %552 = vrot.lane.b32.xlu0 %v542_v4, %s4815_s11  ;;  %v1772_v4 = vld [vmem:[%s6214_s3 + $0x118] sm:$0xff]  ;;  %s3293_s11 = sshll.u32 %s216_s10, 4  ;;  %s6171_s11 = int_to_ptr.vmem [resolvable:$true] %s3293_s11 }
  0x27   : > { %719 = vrot.lane.b32.xlu1 %v4920_v2, %s4816_s12 }
  0x29   : > { %721 = vrot.lane.b32.xlu0 %v711_v5, %s4816_s12 }
  0x2b   : > { %890 = vrot.lane.b32.xlu1 %v880_v6, %s4817_s13  ;;  %v1773_v6 = vld [vmem:[%s6214_s3 + $0x120] sm:$0xff] }
  0x2d   : > { %717 = vrot.lane.b32.xlu0 %v4915_v1, %s4816_s12 }
  0x2f   : > { %888 = vrot.lane.b32.xlu1 %v4920_v2, %s4817_s13 }
  0x31   : > { %1059 = vrot.lane.b32.xlu0 %v1049_v7, %s4818_s14  ;;  %v1774_v7 = vld [vmem:[%s6214_s3 + $0x128] sm:$0xff] }
  0x33   : > { %1228 = vrot.lane.b32.xlu1 %v1218_v8, %s4819_s15  ;;  %v4342_v8 = vpack.c.bf16 %v1774_v7, %v1773_v6 }
  0x35   : > { %886 = vrot.lane.b32.xlu0 %v4915_v1, %s4817_s13 }
  0x37   : > { %1057 = vrot.lane.b32.xlu1 %v4920_v2, %s4818_s14 }
  0x39   : > { %1397 = vrot.lane.b32.xlu0 %v1387_v9, %s4820_s16  ;;  %v1775_v9 = vld [vmem:[%s6214_s3 + $0x130] sm:$0xff] }
  0x3b   : > { %1566 = vrot.lane.b32.xlu1 %v1556_v10, %s4821_s17  ;;  %v1776_v10 = vld [vmem:[%s6214_s3 + $0x138] sm:$0xff] }
  0x3d   : > { %1055 = vrot.lane.b32.xlu0 %v4915_v1, %s4818_s14  ;;  %s6169_s14 = scalar_lea.hbm %s6216_s5, %s3709_s9 }
  0x3f   : > { %1224 = vrot.lane.b32.xlu1 %v4915_v1, %s4819_s15 }
  0x41   : > { %1226 = vrot.lane.b32.xlu0 %v4920_v2, %s4819_s15  ;;  %s3281_s15 = scalar_lea.sflag [#allocation3], %s215_s8 }
  0x43   : > { %1393 = vrot.lane.b32.xlu1 %v4915_v1, %s4820_s16 }
  0x45   : > { %1395 = vrot.lane.b32.xlu0 %v4920_v2, %s4820_s16  ;;  %s4748_s16 = scalar_lea.vmem %s6171_s11, 16 }
  0x46   : > { %p4749_p11 = scmp.ne.s32.totalorder %s6171_s11, %s4748_s16 }
  0x47   : > { %1562 = vrot.lane.b32.xlu1 %v4915_v1, %s4821_s17 }
  0x48   : > { %p4750_p12 = pnand %p4749_p11, %p4893_p5 }
  0x49   : > { %1564 = vrot.lane.b32.xlu0 %v4920_v2, %s4821_s17  ;;  %s4752_s17 = sshll.u32 %s4824_s22, 4  ;;  %s4753_s17 = int_to_ptr.vmem [resolvable:$false] %s4752_s17 }
  0x4a   : > { %p4751_p13 = pneg %p4750_p12  ;;  %s4754_s23 = scalar_lea.vmem %s4753_s17, 32 }
  0x4b   : > { %p4755_p0 = scmp.lt.s32.totalorder %s6171_s11, %s4753_s17  ;;  %p4756_p1 = scmp.lt.s32.totalorder %s4754_s23, %s4748_s16 }
  0x4d   : > { %1727 = vperm.xlu0 %4746, %v1724_v11   ;;  %v4345_v11 = vpack.c.bf16 %v1776_v10, %v1775_v9  ;;  %p4757_p2 = por %p4756_p1, %p4755_p0 }
  0x4f   : > { %p4758_p3 = pnand %p4757_p2, %p4751_p13 }
  0x8d   : > { %v231_v13 = vpop.permute.xlu1 %230 }
  0x8f   : > { %v233_v14 = vpop.permute.xlu0 %232 }
  0x90   : > { %v237_v20 = vsel %vm236_vm1, %v231_v13, %v233_v14  ;;  %v1753_v13 = vld [vmem:[%s6214_s3 + $0x80] sm:$0xff] }
  0x91   : > { %v551_v15 = vpop.permute.xlu1 %550 }
  0x93   : > { %v235_v16 = vpop.permute.xlu0 %234 }
  0x94   : > { %v238_v17 = vsel %vm236_vm1, %v233_v14, %v235_v16  ;;  %v1754_v14 = vld [vmem:[%s6214_s3 + $0x88] sm:$0xff] }
  0x95   : > { %3354 = vmatprep.subr.msk.mxu0 %vm243_vm2, %v238_v17  ;;  %v549_v19 = vpop.permute.xlu1 %548  ;;  %v1738_v17 = vld [vmem:[%s6214_s3 + $0x8] sm:$0xff] }
  0x96   : > { %3355 = vmatpush1.msk.msra.mxu0 %vm243_vm2, %v237_v20  ;;  %v555_v31 = vsel %vm554_vm4, %v549_v19, %v551_v15  ;;  %v3425_v19 = vld [vmem:[%s6214_s3 + $0x1d0] sm:$0xff] }
  0x97   : > { %3356 = vmatmul.mubr.msk.f32.vlgmr.msra.gmra.mrb[0].mxu0 %vm239_vm3, %v3353_v18  ;;  %4090 = vmatprep.subr.mxu0 %v4812_v0  ;;  %v553_v22 = vpop.permute.xlu0 %552 }
  0x98   : > { %4091 = vmatpush3.msk.msra.mxu0 %vm243_vm2, %v235_v16  ;;  %4101 = vmatpush3.msk.msra.mxu1 %vm243_vm2, %v553_v22  ;;  %v556_v28 = vsel %vm554_vm4, %v551_v15, %v553_v22  ;;  %v1737_v15 = vld [vmem:[%s6214_s3] sm:$0xff]  ;;  %v4303_v16 = vpack.c.bf16 %v1754_v14, %v1753_v13  ;;  %v1755_v22 = vld [vmem:[%s6214_s3 + $0x90] sm:$0xff] }
  0x99   : > { %4103 = vmatmul.mubr.msk.f32.vlgmr.msra.gmra.mrb[0].mxu1 %vm239_vm3, %v3364_v21  ;;  %v720_v23 = vpop.permute.xlu1 %719  ;;  %4092 = vmatprep.mubr.msk.f32.mxu0 %vm4813_vm0, %v4812_v0  ;;  %v4305_v20 = vpack.c.bf16 %v1738_v17, %v1737_v15 }
  0x9a   : > { %3359 = vmatprep.subr.msk.mxu0 %vm243_vm2, %v4920_v2  ;;  %4105 = vmatprep.subr.mxu1 %v4812_v0  ;;  %v4823_v2 = vmov 0.0|0.0  }
  0x9b   : > { %4093 = vmatmul.mubr.msk.f32.vlgmr.msra.gmra.mrb[2].mxu0 %vm239_vm3, %v3353_v18  ;;  %v722_v25 = vpop.permute.xlu0 %721  ;;  %4107 = vmatprep.mubr.msk.f32.mxu1 %vm4813_vm0, %v4812_v0  ;;  %v3424_v18 = vld [vmem:[%s6214_s3 + $0x1c8] sm:$0xff] }
  0x9c   : > { %3360 = vmatpush1.msk.msra.mxu0 %vm243_vm2, %v4915_v1  ;;  %4106 = vmatpush3.msk.msra.mxu1 %vm243_vm2, %v722_v25  ;;  %v725_v33 = vsel %vm723_vm5, %v720_v23, %v722_v25  ;;  %v4336_v1 = vpack.c.bf16 %v1770_v63, %v1769_v62  ;;  %v1740_v25 = vld [vmem:[%s6214_s3 + $0x18] sm:$0xff] }
  0x9d   : > { %4108 = vmatmul.mubr.msk.f32.vlgmr.msra.gmra.mrb[2].mxu1 %vm239_vm3, %v4972_v24  ;;  %v891_v27 = vpop.permute.xlu1 %890  ;;  %464 = vmatprep.mubr.f32.mxu0 %v4812_v0  ;;  %v1752_v62 = vld [vmem:[%s6214_s3 + $0x78] sm:$0xff] }
  0x9e   : > { %4095 = vmatprep.subr.mxu0 %v4812_v0  ;;  %4110 = vmatprep.subr.mxu1 %v4812_v0 }
  0x9f   : > { %3361 = vmatmul.mubr.msk.f32.vlgmr.msra.gmra.mrb[0].mxu0 %vm239_vm3, %v224_v26  ;;  %v718_v30 = vpop.permute.xlu0 %717  ;;  %4111 = vmatpush3.msk.msra.mxu1 %vm243_vm2, %v891_v27 }
  0xa0   : > { %4096 = vmatpush3.msk.msra.mxu0 %vm243_vm2, %v4924_v3  ;;  %4112 = vmatprep.mubr.msk.f32.mxu1 %vm4813_vm0, %v4812_v0  ;;  %v724_v36 = vsel %vm723_vm5, %v718_v30, %v720_v23  ;;  %v1771_v3 = vld [vmem:[%s6214_s3 + $0x110] sm:$0xff]  ;;  %v1756_v23 = vld [vmem:[%s6214_s3 + $0x98] sm:$0xff] }
  0xa1   : > { %3365 = vmatprep.subr.msk.mxu0 %vm243_vm2, %v556_v28  ;;  %4113 = vmatmul.mubr.msk.f32.vlgmr.msra.gmra.mrb[4].mxu1 %vm239_vm3, %v3376_v29  ;;  %v889_v32 = vpop.permute.xlu1 %888  ;;  %v4339_v5 = vpack.c.bf16 %v1772_v4, %v1771_v3  ;;  %v1757_v28 = vld [vmem:[%s6214_s3 + $0xa0] sm:$0xff]  ;;  %v3468_v3 = vld [vmem:[%s6214_s3 + $0x318] sm:$0xff] }
  0xa2   : > { %4097 = vmatprep.mubr.msk.f32.mxu0 %vm4813_vm0, %v4812_v0  ;;  %4115 = vmatprep.subr.mxu1 %v4812_v0  ;;  %v894_v38 = vsel %vm892_vm6, %v889_v32, %v891_v27 }
  0xa3   : > { %4098 = vmatmul.mubr.msk.f32.vlgmr.msra.gmra.mrb[4].mxu0 %vm239_vm3, %v224_v26  ;;  %v1060_v35 = vpop.permute.xlu0 %1059  ;;  %4117 = vmatprep.mubr.msk.f32.mxu1 %vm4813_vm0, %v4812_v0  ;;  %v4307_v26 = vpack.c.bf16 %v1756_v23, %v1755_v22 }
  0xa4   : > { %3366 = vmatpush1.msk.msra.mxu0 %vm243_vm2, %v555_v31  ;;  %4116 = vmatpush3.msk.msra.mxu1 %vm243_vm2, %v1060_v35  ;;  %v1741_v31 = vld [vmem:[%s6214_s3 + $0x20] sm:$0xff] }
  0xa5   : > { %3371 = vmatprep.subr.msk.mxu0 %vm243_vm2, %v725_v33  ;;  %4118 = vmatmul.mubr.msk.f32.vlgmr.msra.gmra.mrb[6].mxu1 %vm239_vm3, %v3382_v34  ;;  %v1229_v37 = vpop.permute.xlu1 %1228 }
  0xa6   : > { %630 = vmatprep.mubr.f32.mxu0 %v4812_v0  ;;  %4120 = vmatprep.subr.mxu1 %v4812_v0 }
  0xa7   : > { %3367 = vmatmul.mubr.msk.f32.vlgmr.msra.gmra.mrb[0].mxu0 %vm239_vm3, %v3364_v21  ;;  %v887_v40 = vpop.permute.xlu0 %886  ;;  %4121 = vmatpush3.msk.msra.mxu1 %vm243_vm2, %v1229_v37  ;;  %v4347_v21 = vpack.c.bf16 %v3425_v19, %v3424_v18 }
  0xa8   : > { %3372 = vmatpush1.msk.msra.mxu0 %vm243_vm2, %v724_v36  ;;  %4122 = vmatprep.mubr.msk.f32.mxu1 %vm4813_vm0, %v4812_v0  ;;  %v893_v44 = vsel %vm892_vm6, %v887_v40, %v889_v32  ;;  %v1742_v32 = vld [vmem:[%s6214_s3 + $0x28] sm:$0xff]  ;;  %v1743_v36 = vld [vmem:[%s6214_s3 + $0x30] sm:$0xff]  ;;  %v1761_v40 = vld [vmem:[%s6214_s3 + $0xc0] sm:$0xff] }
  0xa9   : > { %4123 = vmatmul.mubr.msk.f32.vlgmr.msra.gmra.mrb[8].mxu1 %vm239_vm3, %v3388_v39  ;;  %v1058_v41 = vpop.permute.xlu1 %1057  ;;  %3377 = vmatprep.subr.msk.mxu0 %vm243_vm2, %v894_v38  ;;  %v4313_v33 = vpack.c.bf16 %v1742_v32, %v1741_v31  ;;  %v1744_v38 = vld [vmem:[%s6214_s3 + $0x38] sm:$0xff]  ;;  %v3408_v32 = vld [vmem:[%s6214_s3 + $0x148] sm:$0xff] }
  0xaa   : > { %4125 = vmatprep.subr.mxu1 %v4812_v0  ;;  %4127 = vmatprep.mubr.msk.f32.mxu1 %vm4813_vm0, %v4812_v0  ;;  %v1063_v46 = vsel %vm1061_vm7, %v1058_v41, %v1060_v35  ;;  %v1760_v35 = vld [vmem:[%s6214_s3 + $0xb8] sm:$0xff] }
  0xab   : > { %v1398_v43 = vpop.permute.xlu0 %1397  ;;  %799 = vmatprep.mubr.f32.mxu0 %v4812_v0 }
  0xac   : > { %4126 = vmatpush3.msk.msra.mxu1 %vm243_vm2, %v1398_v43 }
  0xad   : > { %4128 = vmatmul.mubr.msk.f32.vlgmr.msra.gmra.mrb[10].mxu1 %vm239_vm3, %v3394_v42  ;;  %v1567_v45 = vpop.permute.xlu1 %1566  ;;  %4130 = vmatprep.subr.mxu1 %v4812_v0 }
  0xae   : > { %4131 = vmatpush3.msk.msra.mxu1 %vm243_vm2, %v1567_v45  ;;  %4132 = vmatprep.mubr.msk.f32.mxu1 %vm4813_vm0, %v4812_v0 }
  0xaf   : > { %3373 = vmatmul.mubr.msk.f32.vlgmr.msra.gmra.mrb[0].mxu0 %vm239_vm3, %v4972_v24  ;;  %v1056_v48 = vpop.permute.xlu0 %1055  ;;  %4335 = vmatprep.subr.bf16.mxu1 %v4823_v2  ;;  %v1739_v24 = vld [vmem:[%s6214_s3 + $0x10] sm:$0xff] }
  0xb0   : > { %3378 = vmatpush1.msk.msra.mxu0 %vm243_vm2, %v893_v44  ;;  %968 = vmatprep.mubr.f32.mxu0 %v4812_v0  ;;  %v1062_v49 = vsel %vm1061_vm7, %v1056_v48, %v1058_v41  ;;  %v4309_v27 = vpack.c.bf16 %v1740_v25, %v1739_v24  ;;  %v1762_v41 = vld [vmem:[%s6214_s3 + $0xc8] sm:$0xff]  ;;  %v1747_v48 = vld [vmem:[%s6214_s3 + $0x50] sm:$0xff] }
  0xb1   : > { %3383 = vmatprep.subr.msk.mxu0 %vm243_vm2, %v1063_v46  ;;  %4133 = vmatmul.mubr.msk.f32.vlgmr.msra.gmra.mrb[12].mxu1 %vm239_vm3, %v3400_v47  ;;  %v1225_v52 = vpop.permute.xlu1 %1224  ;;  %v1746_v44 = vld [vmem:[%s6214_s3 + $0x48] sm:$0xff]  ;;  %v1763_v46 = vld [vmem:[%s6214_s3 + $0xd0] sm:$0xff] }
  0xb2   : > { %4153 = vmatprep.mubr.msk.f32.mxu1 %vm4813_vm0, %v4812_v0  ;;  %4337 = vmatpush3.bf16.msra.mxu1 %v4336_v1  ;;  %v3467_v1 = vld [vmem:[%s6214_s3 + $0x310] sm:$0xff] }
  0xb3   : > { %v1227_v50 = vpop.permute.xlu0 %1226  ;;  %4338 = vmatprep.subr.bf16.mxu1 %v4823_v2  ;;  %v4391_v4 = vpack.c.bf16 %v3468_v3, %v3467_v1  ;;  %v3418_v1 = vld [vmem:[%s6214_s3 + $0x198] sm:$0xff]  ;;  %v3419_v3 = vld [vmem:[%s6214_s3 + $0x1a0] sm:$0xff] }
  0xb4   : > { %v1232_v51 = vsel %vm1230_vm8, %v1227_v50, %v1229_v37  ;;  %v1231_v54 = vsel %vm1230_vm8, %v1225_v52, %v1227_v50  ;;  %v1748_v50 = vld [vmem:[%s6214_s3 + $0x58] sm:$0xff]  ;;  %v1765_v52 = vld [vmem:[%s6214_s3 + $0xe0] sm:$0xff] }
  0xb5   : > { %v1394_v56 = vpop.permute.xlu1 %1393 }
  0xb6   : > { %4340 = vmatpush3.bf16.msra.mxu1 %v4339_v5 }
  0xb7   : > { %3379 = vmatmul.mubr.msk.f32.vlgmr.msra.gmra.mrb[0].mxu0 %vm239_vm3, %v3376_v29  ;;  %v1396_v53 = vpop.permute.xlu0 %1395  ;;  %4341 = vmatprep.subr.bf16.mxu1 %v4823_v2  ;;  %v1758_v29 = vld [vmem:[%s6214_s3 + $0xa8] sm:$0xff] }
  0xb8   : > { %3384 = vmatpush1.msk.msra.mxu0 %vm243_vm2, %v1062_v49  ;;  %1137 = vmatprep.mubr.f32.mxu0 %v4812_v0  ;;  %v1401_v55 = vsel %vm1399_vm9, %v1396_v53, %v1398_v43  ;;  %v1400_v58 = vsel %vm1399_vm9, %v1394_v56, %v1396_v53  ;;  %v4311_v30 = vpack.c.bf16 %v1758_v29, %v1757_v28  ;;  %v1766_v53 = vld [vmem:[%s6214_s3 + $0xe8] sm:$0xff] }
  0xb9   : > { %3389 = vmatprep.subr.msk.mxu0 %vm243_vm2, %v1232_v51  ;;  %v1563_v60 = vpop.permute.xlu1 %1562  ;;  %v4319_v43 = vpack.c.bf16 %v1762_v41, %v1761_v40  ;;  %v4325_v51 = vpack.c.bf16 %v1748_v50, %v1747_v48  ;;  %v1750_v56 = vld [vmem:[%s6214_s3 + $0x68] sm:$0xff]  ;;  %v3410_v40 = vld [vmem:[%s6214_s3 + $0x158] sm:$0xff]  ;;  %v3411_v41 = vld [vmem:[%s6214_s3 + $0x160] sm:$0xff] }
  0xba   : > { %4343 = vmatpush3.bf16.msra.mxu1 %v4342_v8  ;;  %v3430_v48 = vld [vmem:[%s6214_s3 + $0x1f8] sm:$0xff] }
  0xbb   : > { %v1565_v57 = vpop.permute.xlu0 %1564  ;;  %4344 = vmatprep.subr.bf16.mxu1 %v4823_v2 }
  0xbc   : > { %v1570_v59 = vsel %vm1568_vm10, %v1565_v57, %v1567_v45  ;;  %v1569_v61 = vsel %vm1568_vm10, %v1563_v60, %v1565_v57 }
  0xbe   : > { %4346 = vmatpush3.bf16.msra.mxu1 %v4345_v11 }
  0xbf   : > { %3385 = vmatmul.mubr.msk.f32.vlgmr.msra.gmra.mrb[0].mxu0 %vm239_vm3, %v3382_v34  ;;  %4151 = vmatprep.subr.mxu1 %v4812_v0  ;;  %v1759_v34 = vld [vmem:[%s6214_s3 + $0xb0] sm:$0xff] }
  0xc0   : > { %3390 = vmatpush1.msk.msra.mxu0 %vm243_vm2, %v1231_v54  ;;  %1306 = vmatprep.mubr.f32.mxu0 %v4812_v0  ;;  %v4315_v37 = vpack.c.bf16 %v1760_v35, %v1759_v34  ;;  %v1749_v54 = vld [vmem:[%s6214_s3 + $0x60] sm:$0xff]  ;;  %v3426_v34 = vld [vmem:[%s6214_s3 + $0x1d8] sm:$0xff] }
  0xc1   : > { %3395 = vmatprep.subr.msk.mxu0 %vm243_vm2, %v1401_v55  ;;  %v4327_v55 = vpack.c.bf16 %v1766_v53, %v1765_v52  ;;  %v4329_v57 = vpack.c.bf16 %v1750_v56, %v1749_v54  ;;  %v3427_v35 = vld [vmem:[%s6214_s3 + $0x1e0] sm:$0xff]  ;;  %v3414_v52 = vld [vmem:[%s6214_s3 + $0x178] sm:$0xff]  ;;  %v3432_v54 = vld [vmem:[%s6214_s3 + $0x208] sm:$0xff] }
  0xc2   : > { %4152 = vmatpush3.msk.msra.mxu1 %vm243_vm2, %v1777_v12  ;;  %v3415_v53 = vld [vmem:[%s6214_s3 + $0x180] sm:$0xff] }
  0xc3   : > { %4348 = vmatprep.subr.bf16.mxu1 %v4347_v21  ;;  %v4361_v56 = vpack.c.bf16 %v3415_v53, %v3414_v52  ;;  %v3457_v53 = vld [vmem:[%s6214_s3 + $0x2c0] sm:$0xff] }
  0xc7   : > { %3391 = vmatmul.mubr.msk.f32.vlgmr.msra.gmra.mrb[0].mxu0 %vm239_vm3, %v3388_v39  ;;  %v4317_v39 = vpack.c.bf16 %v1744_v38, %v1743_v36 }
  0xc8   : > { %3396 = vmatpush1.msk.msra.mxu0 %vm243_vm2, %v1400_v58  ;;  %1475 = vmatprep.mubr.f32.mxu0 %v4812_v0  ;;  %v1767_v58 = vld [vmem:[%s6214_s3 + $0xf0] sm:$0xff] }
  0xc9   : > { %3401 = vmatprep.subr.msk.mxu0 %vm243_vm2, %v1570_v59  ;;  %v1768_v59 = vld [vmem:[%s6214_s3 + $0xf8] sm:$0xff] }
  0xca   : > { %v4331_v60 = vpack.c.bf16 %v1768_v59, %v1767_v58  ;;  %v3416_v58 = vld [vmem:[%s6214_s3 + $0x188] sm:$0xff]  ;;  %v3417_v59 = vld [vmem:[%s6214_s3 + $0x190] sm:$0xff] }
  0xcc   : > { %v5213_v29 = vpop.permute.xlu0 %1727 }
  0xcf   : > { %3397 = vmatmul.mubr.msk.f32.vlgmr.msra.gmra.mrb[0].mxu0 %vm239_vm3, %v3394_v42  ;;  %v1745_v42 = vld [vmem:[%s6214_s3 + $0x40] sm:$0xff] }
  0xd0   : > { %3402 = vmatpush1.msk.msra.mxu0 %vm243_vm2, %v1569_v61  ;;  %1644 = vmatprep.mubr.f32.mxu0 %v4812_v0  ;;  %v4321_v45 = vpack.c.bf16 %v1746_v44, %v1745_v42  ;;  %v1751_v61 = vld [vmem:[%s6214_s3 + $0x70] sm:$0xff]  ;;  %v3428_v42 = vld [vmem:[%s6214_s3 + $0x1e8] sm:$0xff]  ;;  %v4353_v44 = vpack.c.bf16 %v3411_v41, %v3410_v40  ;;  %v3442_v40 = vld [vmem:[%s6214_s3 + $0x258] sm:$0xff] }
  0xd1   : > { %4304 = vmatprep.subr.bf16.mxu0 %v4303_v16  ;;  %v4333_v63 = vpack.c.bf16 %v1752_v62, %v1751_v61  ;;  %v3435_v61 = vld [vmem:[%s6214_s3 + $0x220] sm:$0xff]  ;;  %v4365_v62 = vpack.c.bf16 %v3417_v59, %v3416_v58  ;;  %v3446_v58 = vld [vmem:[%s6214_s3 + $0x278] sm:$0xff] }
  0xd2   : > { %v3443_v41 = vld [vmem:[%s6214_s3 + $0x260] sm:$0xff] }
  0xd3   : > { %v3447_v59 = vld [vmem:[%s6214_s3 + $0x280] sm:$0xff] }
  0xd7   : > { %3403 = vmatmul.mubr.msk.f32.vlgmr.msra.gmra.mrb[0].mxu0 %vm239_vm3, %v3400_v47  ;;  %v1764_v47 = vld [vmem:[%s6214_s3 + $0xd8] sm:$0xff] }
  0xd8   : > { %4306 = vmatpush3.bf16.msra.mxu0 %v4305_v20  ;;  %v4323_v49 = vpack.c.bf16 %v1764_v47, %v1763_v46  ;;  %v3412_v46 = vld [vmem:[%s6214_s3 + $0x168] sm:$0xff]  ;;  %v3413_v47 = vld [vmem:[%s6214_s3 + $0x170] sm:$0xff] }
  0xd9   : > { %4308 = vmatprep.subr.bf16.mxu0 %v4307_v26  ;;  %v4357_v50 = vpack.c.bf16 %v3413_v47, %v3412_v46  ;;  %v4383_v46 = vpack.c.bf16 %v3443_v41, %v3442_v40  ;;  %v3473_v47 = vld [vmem:[%s6214_s3 + $0x340] sm:$0xff]  ;;  %v3490_v40 = vld [vmem:[%s6214_s3 + $0x3c8] sm:$0xff]  ;;  %v3494_v41 = vld [vmem:[%s6214_s3 + $0x3d8] sm:$0xff] }
  0xdc   : > { %4310 = vmatpush3.bf16.msra.mxu0 %v4309_v27 }
  0xdd   : > { %4312 = vmatprep.subr.bf16.mxu0 %v4311_v30 }
  0xe0   : > { %4314 = vmatpush3.bf16.msra.mxu0 %v4313_v33  ;;  %v3409_v33 = vld [vmem:[%s6214_s3 + $0x150] sm:$0xff] }
  0xe1   : > { %4316 = vmatprep.subr.bf16.mxu0 %v4315_v37  ;;  %v4349_v37 = vpack.c.bf16 %v3409_v33, %v3408_v32 }
  0xe4   : > { %4318 = vmatpush3.bf16.msra.mxu0 %v4317_v39  ;;  %v4351_v39 = vpack.c.bf16 %v3427_v35, %v3426_v34 }
  0xe5   : > { %4320 = vmatprep.subr.bf16.mxu0 %v4319_v43  ;;  %v3429_v43 = vld [vmem:[%s6214_s3 + $0x1f0] sm:$0xff] }
  0xe8   : > { %4322 = vmatpush3.bf16.msra.mxu0 %v4321_v45  ;;  %v4355_v45 = vpack.c.bf16 %v3429_v43, %v3428_v42 }
  0xe9   : > { %4324 = vmatprep.subr.bf16.mxu0 %v4323_v49  ;;  %v3431_v49 = vld [vmem:[%s6214_s3 + $0x200] sm:$0xff] }
  0xec   : > { %4326 = vmatpush3.bf16.msra.mxu0 %v4325_v51  ;;  %v4359_v51 = vpack.c.bf16 %v3431_v49, %v3430_v48  ;;  %v3474_v48 = vld [vmem:[%s6214_s3 + $0x348] sm:$0xff] }
  0xed   : > { %4328 = vmatprep.subr.bf16.mxu0 %v4327_v55  ;;  %v3433_v55 = vld [vmem:[%s6214_s3 + $0x210] sm:$0xff]  ;;  %v3444_v49 = vld [vmem:[%s6214_s3 + $0x268] sm:$0xff]  ;;  %v4403_v52 = vpack.c.bf16 %v3474_v48, %v3473_v47 }
  0xee   : > { %v3496_v48 = vld [vmem:[%s6214_s3 + $0x3e8] sm:$0xff] }
  0xf0   : > { %4330 = vmatpush3.bf16.msra.mxu0 %v4329_v57  ;;  %v4363_v57 = vpack.c.bf16 %v3433_v55, %v3432_v54  ;;  %v3458_v54 = vld [vmem:[%s6214_s3 + $0x2c8] sm:$0xff] }
  0xf1   : > { %4332 = vmatprep.subr.bf16.mxu0 %v4331_v60  ;;  %v3434_v60 = vld [vmem:[%s6214_s3 + $0x218] sm:$0xff] }
  0xf4   : > { %4334 = vmatpush3.bf16.msra.mxu0 %v4333_v63  ;;  %v4367_v63 = vpack.c.bf16 %v3435_v61, %v3434_v60  ;;  %v4405_v60 = vpack.c.bf16 %v3458_v54, %v3457_v53  ;;  %v3527_v53 = vld [vmem:[%s6214_s3 + $0x4e0] sm:$0xff]  ;;  %v3514_v54 = vld [vmem:[%s6214_s3 + $0x478] sm:$0xff] }
  0xf5   : > { %4392 = vmatprep.subr.bf16.mxu0 %v4391_v4  ;;  %v3436_v4 = vld [vmem:[%s6214_s3 + $0x228] sm:$0xff] }
 0x16c   : > { %v703_v5 = vpop.f32.mrb[0].mxu1 }
 0x16d   : > { %v4104_v6 = vpop.f32.mrb[1].mxu1 }
 0x16e   : > { %v387_v7 = vpop.f32.mrb[2].mxu0  ;;  %v4369_v6 = vpack.c.bf16 %v3419_v3, %v3418_v1  ;;  %v4389_v1 = vpack.c.bf16 %v3447_v59, %v3446_v58  ;;  %v3477_v3 = vld [vmem:[%s6214_s3 + $0x360] sm:$0xff]  ;;  %v3498_v58 = vld [vmem:[%s6214_s3 + $0x3f8] sm:$0xff] }
 0x16f   : > { %v4094_v8 = vpop.f32.mrb[3].mxu0  ;;  %v3499_v59 = vld [vmem:[%s6214_s3 + $0x400] sm:$0xff] }
 0x170   : > { %v872_v9 = vpop.f32.mrb[2].mxu1  ;;  %v3420_v8 = vld [vmem:[%s6214_s3 + $0x1a8] sm:$0xff] }
 0x171   : > { %v4109_v10 = vpop.f32.mrb[3].mxu1 }
 0x172   : > { %v3438_v10 = vld [vmem:[%s6214_s3 + $0x238] sm:$0xff] }
 0x174   : > { %v1041_v11 = vpop.f32.mrb[4].mxu1 }
 0x175   : > { %v4114_v12 = vpop.f32.mrb[5].mxu1 }
 0x176   : > { %v537_v13 = vpop.f32.mrb[4].mxu0 }
 0x177   : > { %v538_v14 = vadd.f32 %v537_v13, %v387_v7  ;;  %v4099_v15 = vpop.f32.mrb[5].mxu0 }
 0x178   : > { %v1210_v16 = vpop.f32.mrb[6].mxu1  ;;  %v3423_v15 = vld [vmem:[%s6214_s3 + $0x1c0] sm:$0xff] }
 0x179   : > { %v709_v17 = vadd.f32 %v703_v5, %v538_v14  ;;  %v4119_v18 = vpop.f32.mrb[7].mxu1  ;;  %v3437_v5 = vld [vmem:[%s6214_s3 + $0x230] sm:$0xff]  ;;  %v3422_v14 = vld [vmem:[%s6214_s3 + $0x1b8] sm:$0xff] }
 0x17a   : > { %v4371_v7 = vpack.c.bf16 %v3437_v5, %v3436_v4  ;;  %v3478_v4 = vld [vmem:[%s6214_s3 + $0x368] sm:$0xff] }
 0x17b   : > { %v878_v19 = vadd.f32 %v872_v9, %v709_v17  ;;  %v3421_v9 = vld [vmem:[%s6214_s3 + $0x1b0] sm:$0xff] }
 0x17c   : > { %v1379_v20 = vpop.f32.mrb[8].mxu1  ;;  %v4373_v12 = vpack.c.bf16 %v3421_v9, %v3420_v8  ;;  %v3462_v8 = vld [vmem:[%s6214_s3 + $0x2e8] sm:$0xff]  ;;  %v3483_v9 = vld [vmem:[%s6214_s3 + $0x390] sm:$0xff] }
 0x17d   : > { %v1047_v21 = vadd.f32 %v1041_v11, %v878_v19  ;;  %v4124_v22 = vpop.f32.mrb[9].mxu1  ;;  %v3439_v11 = vld [vmem:[%s6214_s3 + $0x240] sm:$0xff] }
 0x17e   : > { %v4375_v13 = vpack.c.bf16 %v3439_v11, %v3438_v10  ;;  %v3484_v10 = vld [vmem:[%s6214_s3 + $0x398] sm:$0xff]  ;;  %v3479_v11 = vld [vmem:[%s6214_s3 + $0x370] sm:$0xff] }
 0x17f   : > { %v1216_v23 = vadd.f32 %v1210_v16, %v1047_v21  ;;  %v4377_v16 = vpack.c.bf16 %v3423_v15, %v3422_v14  ;;  %v3452_v21 = vld [vmem:[%s6214_s3 + $0x298] sm:$0xff]  ;;  %v4424_v15 = vpack.c.bf16 %v3484_v10, %v3483_v9 }
 0x180   : > { %v1548_v24 = vpop.f32.mrb[10].mxu1  ;;  %v3518_v10 = vld [vmem:[%s6214_s3 + $0x498] sm:$0xff] }
 0x181   : > { %v1385_v25 = vadd.f32 %v1379_v20, %v1216_v23  ;;  %v4129_v26 = vpop.f32.mrb[11].mxu1  ;;  %v3451_v20 = vld [vmem:[%s6214_s3 + $0x290] sm:$0xff]  ;;  %v3440_v23 = vld [vmem:[%s6214_s3 + $0x248] sm:$0xff] }
 0x182   : > { %v3469_v26 = vld [vmem:[%s6214_s3 + $0x320] sm:$0xff] }
 0x183   : > { %v1554_v27 = vadd.f32 %v1548_v24, %v1385_v25  ;;  %v3441_v25 = vld [vmem:[%s6214_s3 + $0x250] sm:$0xff] }
 0x184   : > { %v1717_v28 = vpop.f32.mrb[12].mxu1  ;;  %v4380_v34 = vpack.c.bf16 %v3441_v25, %v3440_v23  ;;  %v3482_v23 = vld [vmem:[%s6214_s3 + $0x388] sm:$0xff] }
 0x185   : > { %v1723_v30 = vadd.f32 %v1717_v28, %v1554_v27  ;;  %v4134_v31 = vpop.f32.mrb[13].mxu1  ;;  %v3470_v27 = vld [vmem:[%s6214_s3 + $0x328] sm:$0xff] }
 0x186   : > { %v3454_v31 = vld [vmem:[%s6214_s3 + $0x2a8] sm:$0xff]  ;;  %v4395_v35 = vpack.c.bf16 %v3470_v27, %v3469_v26  ;;  %v3465_v27 = vld [vmem:[%s6214_s3 + $0x300] sm:$0xff] }
 0x187   : > { %v1732_v36 = vadd.f32 %v5213_v29, %v1723_v30  ;;  %v3453_v30 = vld [vmem:[%s6214_s3 + $0x2a0] sm:$0xff] }
 0x188   : > { %v4397_v42 = vpack.c.bf16 %v3454_v31, %v3453_v30  ;;  %v3466_v30 = vld [vmem:[%s6214_s3 + $0x308] sm:$0xff]  ;;  %v3487_v31 = vld [vmem:[%s6214_s3 + $0x3b0] sm:$0xff] }
 0x189   : > { %v5228_v38 = vmax.f32 %v1732_v36, 0.0  ;;  %v3471_v36 = vld [vmem:[%s6214_s3 + $0x330] sm:$0xff] }
 0x18b   : > { %4154 = vmatmul.mubr.msk.f32.vlgmr.msra.gmra.mrb[14].mxu1 %vm1778_vm11, %v5228_v38 }
 0x18c   : > { %4350 = vmatpush3.bf16.msra.mxu1 %v4349_v37  ;;  %v3472_v37 = vld [vmem:[%s6214_s3 + $0x338] sm:$0xff] }
 0x18d   : > { %4352 = vmatprep.subr.bf16.mxu1 %v4351_v39  ;;  %v4399_v43 = vpack.c.bf16 %v3472_v37, %v3471_v36  ;;  %v3489_v37 = vld [vmem:[%s6214_s3 + $0x3c0] sm:$0xff] }
 0x190   : > { %4354 = vmatpush3.bf16.msra.mxu1 %v4353_v44  ;;  %v3455_v44 = vld [vmem:[%s6214_s3 + $0x2b0] sm:$0xff] }
 0x191   : > { %4356 = vmatprep.subr.bf16.mxu1 %v4355_v45  ;;  %v3456_v45 = vld [vmem:[%s6214_s3 + $0x2b8] sm:$0xff] }
 0x194   : > { %4358 = vmatpush3.bf16.msra.mxu1 %v4357_v50  ;;  %v3445_v50 = vld [vmem:[%s6214_s3 + $0x270] sm:$0xff] }
 0x195   : > { %4360 = vmatprep.subr.bf16.mxu1 %v4359_v51  ;;  %v4401_v51 = vpack.c.bf16 %v3456_v45, %v3455_v44  ;;  %v4386_v55 = vpack.c.bf16 %v3445_v50, %v3444_v49  ;;  %v3513_v44 = vld [vmem:[%s6214_s3 + $0x470] sm:$0xff]  ;;  %v4433_v45 = vpack.c.bf16 %v3490_v40, %v3489_v37  ;;  %v3570_v37 = vld [vmem:[%s6214_s3 + $0x628] sm:$0xff] }
 0x196   : > { %v3497_v49 = vld [vmem:[%s6214_s3 + $0x3f0] sm:$0xff] }
 0x197   : > { %v3525_v40 = vld [vmem:[%s6214_s3 + $0x4d0] sm:$0xff] }
 0x198   : > { %4362 = vmatpush3.bf16.msra.mxu1 %v4361_v56  ;;  %v3475_v56 = vld [vmem:[%s6214_s3 + $0x350] sm:$0xff] }
 0x199   : > { %4364 = vmatprep.subr.bf16.mxu1 %v4363_v57  ;;  %v3476_v57 = vld [vmem:[%s6214_s3 + $0x358] sm:$0xff] }
 0x19a   : > { %v4407_v61 = vpack.c.bf16 %v3476_v57, %v3475_v56  ;;  %v4441_v56 = vpack.c.bf16 %v3497_v49, %v3496_v48  ;;  %v3491_v57 = vld [vmem:[%s6214_s3 + $0x3d0] sm:$0xf]  ;;  %v3572_v49 = vld [vmem:[%s6214_s3 + $0x638] sm:$0xff] }
 0x19b   : > { %v3571_v48 = vld [vmem:[%s6214_s3 + $0x630] sm:$0xff] }
 0x19c   : > { %4366 = vmatpush3.bf16.msra.mxu1 %v4365_v62  ;;  %v3459_v62 = vld [vmem:[%s6214_s3 + $0x2d0] sm:$0xff] }
 0x19d   : > { %4368 = vmatprep.subr.bf16.mxu1 %v4367_v63  ;;  %v3460_v63 = vld [vmem:[%s6214_s3 + $0x2d8] sm:$0xff] }
 0x19e   : > { %v4409_v5 = vpack.c.bf16 %v3460_v63, %v3459_v62  ;;  %v3516_v62 = vld [vmem:[%s6214_s3 + $0x488] sm:$0xff]  ;;  %v3517_v63 = vld [vmem:[%s6214_s3 + $0x490] sm:$0xff] }
 0x1a0   : > { %4370 = vmatpush3.bf16.msra.mxu1 %v4369_v6  ;;  %v3461_v6 = vld [vmem:[%s6214_s3 + $0x2e0] sm:$0xff] }
 0x1a1   : > { %4372 = vmatprep.subr.bf16.mxu1 %v4371_v7  ;;  %v4411_v7 = vpack.c.bf16 %v3478_v4, %v3477_v3  ;;  %v4413_v14 = vpack.c.bf16 %v3462_v8, %v3461_v6  ;;  %v3528_v3 = vld [vmem:[%s6214_s3 + $0x4e8] sm:$0xff]  ;;  %v3529_v4 = vld [vmem:[%s6214_s3 + $0x4f0] sm:$0xff]  ;;  %v4447_v6 = vpack.c.bf16 %v3517_v63, %v3516_v62 }
 0x1a2   : > { %v3501_v8 = vld [vmem:[%s6214_s3 + $0x410] sm:$0xff]  ;;  %v4471_v9 = vpack.c.bf16 %v3529_v4, %v3528_v3  ;;  %v3540_v4 = vld [vmem:[%s6214_s3 + $0x538] sm:$0xff] }
 0x1a3   : > { %v3539_v3 = vld [vmem:[%s6214_s3 + $0x530] sm:$0xff] }
 0x1a4   : > { %4374 = vmatpush3.bf16.msra.mxu1 %v4373_v12  ;;  %v3480_v12 = vld [vmem:[%s6214_s3 + $0x378] sm:$0xff] }
 0x1a5   : > { %4376 = vmatprep.subr.bf16.mxu1 %v4375_v13  ;;  %v3448_v13 = vld [vmem:[%s6214_s3 + $0x288] sm:$0xf] }
 0x1a8   : > { %4378 = vmatpush3.bf16.msra.mxu1 %v4377_v16  ;;  %v3463_v16 = vld [vmem:[%s6214_s3 + $0x2f0] sm:$0xff] }
 0x1a9   : > { %4379 = vmatprep.subr.bf16.mxu1 %v4823_v2 }
 0x1aa   : > { %v1646_v17 = vpop.f32.mrb[0].mxu0 }
 0x1ab   : > { %v1730_v18 = vadd.f32 %v5213_v29, %v1646_v17  ;;  %v1648_v19 = vpop.f32.mrb[1].mxu0  ;;  %v1972_v17 = vrot.slane %v5228_v38, 1 }
 0x1ac   : > { %v1731_v22 = vadd.f32 %v5213_v29, %v1648_v19  ;;  %v4393_v29 = vpack.c.bf16 %v3452_v21, %v3451_v20  ;;  %v3464_v19 = vld [vmem:[%s6214_s3 + $0x2f8] sm:$0xff]  ;;  %v3485_v20 = vld [vmem:[%s6214_s3 + $0x3a0] sm:$0xff]  ;;  %v3486_v21 = vld [vmem:[%s6214_s3 + $0x3a8] sm:$0xff] }
 0x1ad   : > { %v5322_v24 = vmax.f32 %v1730_v18, 0.0  ;;  %v4415_v18 = vpack.c.bf16 %v3480_v12, %v3479_v11  ;;  %v4417_v25 = vpack.c.bf16 %v3464_v19, %v3463_v16  ;;  %v4427_v26 = vpack.c.bf16 %v3486_v21, %v3485_v20  ;;  %v3519_v11 = vld [vmem:[%s6214_s3 + $0x4a0] sm:$0xff]  ;;  %v3530_v12 = vld [vmem:[%s6214_s3 + $0x4f8] sm:$0xff]  ;;  %v3520_v19 = vld [vmem:[%s6214_s3 + $0x4a8] sm:$0xff] }
 0x1ae   : > { %v5333_v28 = vmax.f32 %v1731_v22, 0.0  ;;  %v3481_v22 = vld [vmem:[%s6214_s3 + $0x380] sm:$0xff]  ;;  %v3502_v16 = vld [vmem:[%s6214_s3 + $0x418] sm:$0xff]  ;;  %v3521_v20 = vld [vmem:[%s6214_s3 + $0x4b0] sm:$0xff] }
 0x1af   : > { %v1970_v39 = vrot.slane %v5322_v24, 1  ;;  %v2163_v47 = vrot.slane %v5322_v24, 2  ;;  %v3532_v21 = vld [vmem:[%s6214_s3 + $0x508] sm:$0xff]  ;;  %v2356_v62 = vrot.slane %v5322_v24, 3 }
 0x1b0   : > { %1849 = vmatprep.mubr.f32.mxu0 %v5333_v28  ;;  %v1971_v32 = vrot.slane %v5333_v28, 1  ;;  %v2164_v33 = vrot.slane %v5333_v28, 2 }
 0x1b1   : > { %1850 = vmatmul.mubr.f32.vlgmr.msra.gmra.mrb[6].mxu0 %v5322_v24 }
 0x1b2   : > { %4394 = vmatpush3.bf16.msra.mxu0 %v4393_v29  ;;  %2044 = vmatprep.mubr.f32.mxu1 %v1971_v32  ;;  %v4419_v29 = vpack.c.bf16 %v3482_v23, %v3481_v22  ;;  %v3488_v32 = vld [vmem:[%s6214_s3 + $0x3b8] sm:$0xff]  ;;  %v3533_v22 = vld [vmem:[%s6214_s3 + $0x510] sm:$0xff] }
 0x1b3   : > { %2237 = vmatprep.mubr.f32.mxu0 %v2164_v33  ;;  %2045 = vmatmul.mubr.f32.vlgmr.msra.gmra.mrb[16].mxu1 %v1970_v39  ;;  %v3510_v33 = vld [vmem:[%s6214_s3 + $0x458] sm:$0xff]  ;;  %v4430_v36 = vpack.c.bf16 %v3488_v32, %v3487_v31  ;;  %v3523_v31 = vld [vmem:[%s6214_s3 + $0x4c0] sm:$0xff] }
 0x1b4   : > { %4381 = vmatpush3.bf16.msra.mxu1 %v4380_v34  ;;  %4396 = vmatprep.subr.bf16.mxu0 %v4395_v35  ;;  %v3511_v34 = vld [vmem:[%s6214_s3 + $0x460] sm:$0xff]  ;;  %v4421_v35 = vpack.c.bf16 %v3466_v30, %v3465_v27  ;;  %v3505_v27 = vld [vmem:[%s6214_s3 + $0x430] sm:$0xff]  ;;  %v3522_v30 = vld [vmem:[%s6214_s3 + $0x4b8] sm:$0xff] }
 0x1b5   : > { %4382 = vmatprep.subr.bf16.mxu1 %v4823_v2  ;;  %4174 = vmatprep.mubr.msk.f32.mxu1 %vm4813_vm0, %v4812_v0  ;;  %v4435_v39 = vpack.c.bf16 %v3511_v34, %v3510_v33  ;;  %v3506_v33 = vld [vmem:[%s6214_s3 + $0x438] sm:$0xff]  ;;  %v4459_v34 = vpack.c.bf16 %v3523_v31, %v3522_v30  ;;  %v3561_v31 = vld [vmem:[%s6214_s3 + $0x5e0] sm:$0xff] }
 0x1b6   : > { %4398 = vmatpush3.bf16.msra.mxu0 %v4397_v42  ;;  %v3495_v42 = vld [vmem:[%s6214_s3 + $0x3e0] sm:$0xff] }
 0x1b7   : > { %4400 = vmatprep.subr.bf16.mxu0 %v4399_v43  ;;  %v3512_v43 = vld [vmem:[%s6214_s3 + $0x468] sm:$0xff] }
 0x1b8   : > { %4384 = vmatpush3.bf16.msra.mxu1 %v4383_v46  ;;  %v4437_v46 = vpack.c.bf16 %v3495_v42, %v3494_v41  ;;  %v4439_v50 = vpack.c.bf16 %v3513_v44, %v3512_v43  ;;  %v3534_v41 = vld [vmem:[%s6214_s3 + $0x518] sm:$0xf]  ;;  %v3508_v44 = vld [vmem:[%s6214_s3 + $0x448] sm:$0xff] }
 0x1b9   : > { %4385 = vmatprep.subr.bf16.mxu1 %v4823_v2 }
 0x1ba   : > { %4402 = vmatpush3.bf16.msra.mxu0 %v4401_v51  ;;  %v3526_v51 = vld [vmem:[%s6214_s3 + $0x4d8] sm:$0xff] }
 0x1bb   : > { %4404 = vmatprep.subr.bf16.mxu0 %v4403_v52  ;;  %v2357_v52 = vrot.slane %v5333_v28, 3 }
 0x1bc   : > { %4387 = vmatpush3.bf16.msra.mxu1 %v4386_v55  ;;  %v3515_v55 = vld [vmem:[%s6214_s3 + $0x480] sm:$0xff] }
 0x1bd   : > { %4388 = vmatprep.subr.bf16.mxu1 %v4823_v2 }
 0x1be   : > { %4406 = vmatpush3.bf16.msra.mxu0 %v4405_v60  ;;  %v4468_v60 = vpack.c.bf16 %v3527_v53, %v3526_v51  ;;  %v3554_v51 = vld [vmem:[%s6214_s3 + $0x5a8] sm:$0xff]  ;;  %v4515_v53 = vpack.c.bf16 %v3572_v49, %v3571_v48 }
 0x1bf   : > { %4408 = vmatprep.subr.bf16.mxu0 %v4407_v61  ;;  %v4443_v61 = vpack.c.bf16 %v3515_v55, %v3514_v54  ;;  %v3537_v55 = vld [vmem:[%s6214_s3 + $0x520] sm:$0xff] }
 0x1c0   : > { %4390 = vmatpush3.bf16.msra.mxu1 %v4389_v1  ;;  %v2165_v1 = vrot.slane %v5228_v38, 2 }
 0x1c1   : > { %4172 = vmatprep.subr.mxu1 %v4812_v0 }
 0x1c2   : > { %4410 = vmatpush3.bf16.msra.mxu0 %v4409_v5  ;;  %v4445_v5 = vpack.c.bf16 %v3499_v59, %v3498_v58  ;;  %v3574_v58 = vld [vmem:[%s6214_s3 + $0x648] sm:$0xff]  ;;  %v3555_v59 = vld [vmem:[%s6214_s3 + $0x5b0] sm:$0xff] }
 0x1c3   : > { %4412 = vmatprep.subr.bf16.mxu0 %v4411_v7  ;;  %v3500_v7 = vld [vmem:[%s6214_s3 + $0x408] sm:$0xff] }
 0x1c4   : > { %4173 = vmatpush3.msk.msra.mxu1 %vm243_vm2, %v3448_v13  ;;  %v3531_v13 = vld [vmem:[%s6214_s3 + $0x500] sm:$0xff] }
 0x1c5   : > { %4175 = vmatmul.mubr.msk.f32.vlgmr.msra.gmra.mrb[14].mxu1 %vm1778_vm11, %v1972_v17  ;;  %4423 = vmatprep.subr.bf16.mxu1 %v4823_v2  ;;  %v3503_v17 = vld [vmem:[%s6214_s3 + $0x420] sm:$0xff] }
 0x1c6   : > { %4414 = vmatpush3.bf16.msra.mxu0 %v4413_v14  ;;  %4425 = vmatpush3.bf16.msra.mxu1 %v4424_v15  ;;  %v4449_v14 = vpack.c.bf16 %v3501_v8, %v3500_v7  ;;  %v4451_v15 = vpack.c.bf16 %v3519_v11, %v3518_v10  ;;  %v4453_v23 = vpack.c.bf16 %v3503_v17, %v3502_v16  ;;  %v3576_v7 = vld [vmem:[%s6214_s3 + $0x658] sm:$0xff]  ;;  %v3557_v8 = vld [vmem:[%s6214_s3 + $0x5c0] sm:$0xff]  ;;  %v3596_v17 = vld [vmem:[%s6214_s3 + $0x6e8] sm:$0xff] }
 0x1c7   : > { %4416 = vmatprep.subr.bf16.mxu0 %v4415_v18  ;;  %4426 = vmatprep.subr.bf16.mxu1 %v4823_v2  ;;  %v4474_v18 = vpack.c.bf16 %v3531_v13, %v3530_v12  ;;  %v4485_v10 = vpack.c.bf16 %v3540_v4, %v3539_v3  ;;  %v3541_v13 = vld [vmem:[%s6214_s3 + $0x540] sm:$0xff]  ;;  %v3560_v16 = vld [vmem:[%s6214_s3 + $0x5d8] sm:$0xff] }
 0x1c8   : > { %4195 = vmatprep.mubr.msk.f32.mxu1 %vm4813_vm0, %v4812_v0  ;;  %v3549_v3 = vld [vmem:[%s6214_s3 + $0x580] sm:$0xff] }
 0x1ca   : > { %4418 = vmatpush3.bf16.msra.mxu0 %v4417_v25  ;;  %4428 = vmatpush3.bf16.msra.mxu1 %v4427_v26  ;;  %v4455_v25 = vpack.c.bf16 %v3521_v20, %v3520_v19  ;;  %v3504_v26 = vld [vmem:[%s6214_s3 + $0x428] sm:$0xff] }
 0x1cb   : > { %4420 = vmatprep.subr.bf16.mxu0 %v4419_v29  ;;  %4429 = vmatprep.subr.bf16.mxu1 %v4823_v2  ;;  %v4477_v29 = vpack.c.bf16 %v3533_v22, %v3532_v21  ;;  %v4457_v32 = vpack.c.bf16 %v3505_v27, %v3504_v26  ;;  %v3580_v20 = vld [vmem:[%s6214_s3 + $0x668] sm:$0xff]  ;;  %v3581_v21 = vld [vmem:[%s6214_s3 + $0x670] sm:$0xff]  ;;  %v3598_v26 = vld [vmem:[%s6214_s3 + $0x6f8] sm:$0xff] }
 0x1cc   : > { %v3543_v22 = vld [vmem:[%s6214_s3 + $0x550] sm:$0xff]  ;;  %v3599_v27 = vld [vmem:[%s6214_s3 + $0x700] sm:$0xff] }
 0x1ce   : > { %4422 = vmatpush3.bf16.msra.mxu0 %v4421_v35  ;;  %4431 = vmatpush3.bf16.msra.mxu1 %v4430_v36  ;;  %v3507_v35 = vld [vmem:[%s6214_s3 + $0x440] sm:$0xff] }
 0x1cf   : > { %4432 = vmatprep.subr.bf16.mxu1 %v4823_v2  ;;  %4436 = vmatprep.subr.bf16.mxu0 %v4435_v39  ;;  %v3569_v36 = vld [vmem:[%s6214_s3 + $0x620] sm:$0xff]  ;;  %v3524_v39 = vld [vmem:[%s6214_s3 + $0x4c8] sm:$0xff]  ;;  %v4461_v42 = vpack.c.bf16 %v3507_v35, %v3506_v33  ;;  %v4525_v33 = vpack.c.bf16 %v3581_v21, %v3580_v20  ;;  %v3639_v20 = vld [vmem:[%s6214_s3 + $0x830] sm:$0xff] }
 0x1d0   : > { %v4512_v43 = vpack.c.bf16 %v3570_v37, %v3569_v36  ;;  %v4527_v36 = vpack.c.bf16 %v3599_v27, %v3598_v26  ;;  %v3582_v37 = vld [vmem:[%s6214_s3 + $0x678] sm:$0xff]  ;;  %v3591_v27 = vld [vmem:[%s6214_s3 + $0x6c0] sm:$0xff] }
 0x1d1   : > { %2238 = vmatmul.mubr.f32.vlgmr.msra.gmra.mrb[8].mxu0 %v2163_v47  ;;  %v3509_v47 = vld [vmem:[%s6214_s3 + $0x450] sm:$0xff]  ;;  %v3640_v21 = vld [vmem:[%s6214_s3 + $0x838] sm:$0xff] }
 0x1d2   : > { %4434 = vmatpush3.bf16.msra.mxu1 %v4433_v45  ;;  %4438 = vmatpush3.bf16.msra.mxu0 %v4437_v46  ;;  %v2358_v45 = vrot.slane %v5228_v38, 3  ;;  %v4463_v46 = vpack.c.bf16 %v3525_v40, %v3524_v39  ;;  %v3583_v39 = vld [vmem:[%s6214_s3 + $0x680] sm:$0xff]  ;;  %v3590_v26 = vld [vmem:[%s6214_s3 + $0x6b8] sm:$0xff] }
 0x1d3   : > { %2430 = vmatprep.mubr.f32.mxu0 %v2357_v52  ;;  %4193 = vmatprep.subr.mxu1 %v4812_v0  ;;  %v4465_v52 = vpack.c.bf16 %v3509_v47, %v3508_v44  ;;  %v3545_v40 = vld [vmem:[%s6214_s3 + $0x560] sm:$0xff]  ;;  %v3600_v44 = vld [vmem:[%s6214_s3 + $0x708] sm:$0xff]  ;;  %v3564_v47 = vld [vmem:[%s6214_s3 + $0x5f8] sm:$0xff]  ;;  %v4529_v48 = vpack.c.bf16 %v3583_v39, %v3582_v37 }
 0x1d4   : > { %4440 = vmatprep.subr.bf16.mxu0 %v4439_v50  ;;  %v3553_v50 = vld [vmem:[%s6214_s3 + $0x5a0] sm:$0xff]  ;;  %v3592_v39 = vld [vmem:[%s6214_s3 + $0x6c8] sm:$0xff] }
 0x1d5   : > { %v4479_v54 = vpack.c.bf16 %v3554_v51, %v3553_v50  ;;  %v3584_v51 = vld [vmem:[%s6214_s3 + $0x688] sm:$0xff] }
 0x1d6   : > { %4194 = vmatpush3.msk.msra.mxu1 %vm243_vm2, %v3491_v57  ;;  %4442 = vmatpush3.bf16.msra.mxu0 %v4441_v56  ;;  %v3538_v56 = vld [vmem:[%s6214_s3 + $0x528] sm:$0xff]  ;;  %v3573_v57 = vld [vmem:[%s6214_s3 + $0x640] sm:$0xff] }
 0x1d7   : > { %4196 = vmatmul.mubr.msk.f32.vlgmr.msra.gmra.mrb[14].mxu1 %vm1778_vm11, %v2165_v1  ;;  %4467 = vmatprep.subr.bf16.mxu1 %v4823_v2  ;;  %v4518_v63 = vpack.c.bf16 %v3574_v58, %v3573_v57  ;;  %v3603_v57 = vld [vmem:[%s6214_s3 + $0x720] sm:$0xff] }
 0x1d8   : > { %4469 = vmatpush3.bf16.msra.mxu1 %v4468_v60  ;;  %4444 = vmatprep.subr.bf16.mxu0 %v4443_v61  ;;  %v3556_v60 = vld [vmem:[%s6214_s3 + $0x5b8] sm:$0xff]  ;;  %v4481_v61 = vpack.c.bf16 %v3538_v56, %v3537_v55  ;;  %v3565_v58 = vld [vmem:[%s6214_s3 + $0x600] sm:$0xff] }
 0x1d9   : > { %4470 = vmatprep.subr.bf16.mxu1 %v4823_v2  ;;  %4216 = vmatprep.mubr.msk.f32.mxu1 %vm4813_vm0, %v4812_v0  ;;  %v4483_v1 = vpack.c.bf16 %v3556_v60, %v3555_v59  ;;  %v3548_v55 = vld [vmem:[%s6214_s3 + $0x578] sm:$0xff]  ;;  %v3566_v59 = vld [vmem:[%s6214_s3 + $0x608] sm:$0xff] }
 0x1da   : > { %4446 = vmatpush3.bf16.msra.mxu0 %v4445_v5  ;;  %v3575_v5 = vld [vmem:[%s6214_s3 + $0x650] sm:$0xff]  ;;  %v3602_v56 = vld [vmem:[%s6214_s3 + $0x718] sm:$0xff]  ;;  %v4503_v4 = vpack.c.bf16 %v3566_v59, %v3565_v58  ;;  %v3645_v59 = vld [vmem:[%s6214_s3 + $0x860] sm:$0xff] }
 0x1db   : > { %4448 = vmatprep.subr.bf16.mxu0 %v4447_v6  ;;  %v2550_v6 = vrot.slane %v5333_v28, 4  ;;  %v4521_v11 = vpack.c.bf16 %v3576_v7, %v3575_v5  ;;  %v3550_v5 = vld [vmem:[%s6214_s3 + $0x588] sm:$0xff]  ;;  %v3605_v7 = vld [vmem:[%s6214_s3 + $0x730] sm:$0xff]  ;;  %v3628_v58 = vld [vmem:[%s6214_s3 + $0x7d8] sm:$0xff] }
 0x1dc   : > { %4472 = vmatpush3.bf16.msra.mxu1 %v4471_v9  ;;  %v3558_v9 = vld [vmem:[%s6214_s3 + $0x5c8] sm:$0xff] }
 0x1dd   : > { %4473 = vmatprep.subr.bf16.mxu1 %v4823_v2  ;;  %v4487_v12 = vpack.c.bf16 %v3558_v9, %v3557_v8  ;;  %v3567_v8 = vld [vmem:[%s6214_s3 + $0x610] sm:$0xff]  ;;  %v3568_v9 = vld [vmem:[%s6214_s3 + $0x618] sm:$0xff] }
 0x1de   : > { %4450 = vmatpush3.bf16.msra.mxu0 %v4449_v14  ;;  %v3542_v14 = vld [vmem:[%s6214_s3 + $0x548] sm:$0xff] }
 0x1df   : > { %4452 = vmatprep.subr.bf16.mxu0 %v4451_v15  ;;  %v3559_v15 = vld [vmem:[%s6214_s3 + $0x5d0] sm:$0xff]  ;;  %v4489_v19 = vpack.c.bf16 %v3542_v14, %v3541_v13  ;;  %v3588_v13 = vld [vmem:[%s6214_s3 + $0x6a8] sm:$0xff] }
 0x1e0   : > { %4475 = vmatpush3.bf16.msra.mxu1 %v4474_v18  ;;  %v3597_v18 = vld [vmem:[%s6214_s3 + $0x6f0] sm:$0xff] }
 0x1e1   : > { %4476 = vmatprep.subr.bf16.mxu1 %v4823_v2  ;;  %v4523_v30 = vpack.c.bf16 %v3597_v18, %v3596_v17  ;;  %v3589_v14 = vld [vmem:[%s6214_s3 + $0x6b0] sm:$0xff]  ;;  %v3552_v17 = vld [vmem:[%s6214_s3 + $0x598] sm:$0xff] }
 0x1e2   : > { %4454 = vmatpush3.bf16.msra.mxu0 %v4453_v23  ;;  %v4491_v23 = vpack.c.bf16 %v3560_v16, %v3559_v15  ;;  %v3551_v15 = vld [vmem:[%s6214_s3 + $0x590] sm:$0xff]  ;;  %v4507_v16 = vpack.c.bf16 %v3568_v9, %v3567_v8  ;;  %v3606_v18 = vld [vmem:[%s6214_s3 + $0x738] sm:$0xff]  ;;  %v2742_v9 = vrot.slane %v5322_v24, 5 }
 0x1e3   : > { %4456 = vmatprep.subr.bf16.mxu0 %v4455_v25  ;;  %v3544_v25 = vld [vmem:[%s6214_s3 + $0x558] sm:$0xff] }
 0x1e4   : > { %4478 = vmatpush3.bf16.msra.mxu1 %v4477_v29  ;;  %v3577_v29 = vld [vmem:[%s6214_s3 + $0x660] sm:$0xf]  ;;  %v4493_v35 = vpack.c.bf16 %v3544_v25, %v3543_v22  ;;  %v4541_v22 = vpack.c.bf16 %v3589_v14, %v3588_v13  ;;  %v3631_v14 = vld [vmem:[%s6214_s3 + $0x7f0] sm:$0xff] }
 0x1e5   : > { %4214 = vmatprep.subr.mxu1 %v4812_v0 }
 0x1e6   : > { %4458 = vmatpush3.bf16.msra.mxu0 %v4457_v32  ;;  %v3562_v32 = vld [vmem:[%s6214_s3 + $0x5e8] sm:$0xff] }
 0x1e7   : > { %4460 = vmatprep.subr.bf16.mxu0 %v4459_v34  ;;  %v2551_v34 = vrot.slane %v5228_v38, 4 }
 0x1e8   : > { %4215 = vmatpush3.msk.msra.mxu1 %vm243_vm2, %v3534_v41  ;;  %v2743_v41 = vrot.slane %v5333_v28, 5 }
 0x1e9   : > { %4217 = vmatmul.mubr.msk.f32.vlgmr.msra.gmra.mrb[14].mxu1 %vm1778_vm11, %v2358_v45  ;;  %4511 = vmatprep.subr.bf16.mxu1 %v4823_v2  ;;  %v3601_v45 = vld [vmem:[%s6214_s3 + $0x710] sm:$0xff] }
 0x1ea   : > { %4462 = vmatpush3.bf16.msra.mxu0 %v4461_v42  ;;  %4513 = vmatpush3.bf16.msra.mxu1 %v4512_v43  ;;  %v4495_v42 = vpack.c.bf16 %v3562_v32, %v3561_v31  ;;  %v3546_v43 = vld [vmem:[%s6214_s3 + $0x568] sm:$0xff]  ;;  %v4531_v50 = vpack.c.bf16 %v3601_v45, %v3600_v44  ;;  %v3624_v31 = vld [vmem:[%s6214_s3 + $0x7b8] sm:$0xff] }
 0x1eb   : > { %4464 = vmatprep.subr.bf16.mxu0 %v4463_v46  ;;  %4514 = vmatprep.subr.bf16.mxu1 %v4823_v2  ;;  %v3563_v46 = vld [vmem:[%s6214_s3 + $0x5f0] sm:$0xff]  ;;  %v4497_v49 = vpack.c.bf16 %v3546_v43, %v3545_v40  ;;  %v3608_v32 = vld [vmem:[%s6214_s3 + $0x748] sm:$0xff] }
 0x1ec   : > { %4237 = vmatprep.mubr.msk.f32.mxu1 %vm4813_vm0, %v4812_v0  ;;  %v3593_v40 = vld [vmem:[%s6214_s3 + $0x6d0] sm:$0xff]  ;;  %v3626_v45 = vld [vmem:[%s6214_s3 + $0x7c8] sm:$0xff] }
 0x1ee   : > { %4466 = vmatpush3.bf16.msra.mxu0 %v4465_v52  ;;  %4516 = vmatpush3.bf16.msra.mxu1 %v4515_v53  ;;  %v3585_v52 = vld [vmem:[%s6214_s3 + $0x690] sm:$0xff] }
 0x1ef   : > { %4480 = vmatprep.subr.bf16.mxu0 %v4479_v54  ;;  %4517 = vmatprep.subr.bf16.mxu1 %v4823_v2  ;;  %v3547_v53 = vld [vmem:[%s6214_s3 + $0x570] sm:$0xff]  ;;  %v4499_v54 = vpack.c.bf16 %v3564_v47, %v3563_v46  ;;  %v4533_v60 = vpack.c.bf16 %v3585_v52, %v3584_v51  ;;  %v3610_v46 = vld [vmem:[%s6214_s3 + $0x758] sm:$0xff]  ;;  %v3611_v47 = vld [vmem:[%s6214_s3 + $0x760] sm:$0xff]  ;;  %v4549_v51 = vpack.c.bf16 %v3593_v40, %v3592_v39 }
 0x1f1   : > { %2431 = vmatmul.mubr.f32.vlgmr.msra.gmra.mrb[10].mxu0 %v2356_v62  ;;  %v4535_v62 = vpack.c.bf16 %v3603_v57, %v3602_v56  ;;  %v3627_v57 = vld [vmem:[%s6214_s3 + $0x7d0] sm:$0xff] }
 0x1f2   : > { %4482 = vmatpush3.bf16.msra.mxu0 %v4481_v61  ;;  %2623 = vmatprep.mubr.f32.mxu0 %v2550_v6  ;;  %v4501_v61 = vpack.c.bf16 %v3548_v55, %v3547_v53  ;;  %v3604_v6 = vld [vmem:[%s6214_s3 + $0x728] sm:$0xff]  ;;  %v4551_v53 = vpack.c.bf16 %v3611_v47, %v3610_v46  ;;  %v3595_v55 = vld [vmem:[%s6214_s3 + $0x6e0] sm:$0xff]  ;;  %v3682_v46 = vld [vmem:[%s6214_s3 + $0x978] sm:$0xff] }
 0x1f3   : > { %4519 = vmatpush3.bf16.msra.mxu1 %v4518_v63  ;;  %4484 = vmatprep.subr.bf16.mxu0 %v4483_v1  ;;  %v3586_v63 = vld [vmem:[%s6214_s3 + $0x698] sm:$0xff]  ;;  %v3587_v1 = vld [vmem:[%s6214_s3 + $0x6a0] sm:$0xff] }
 0x1f4   : > { %4520 = vmatprep.subr.bf16.mxu1 %v4823_v2  ;;  %v3683_v47 = vld [vmem:[%s6214_s3 + $0x980] sm:$0xff] }
 0x1f6   : > { %4486 = vmatpush3.bf16.msra.mxu0 %v4485_v10  ;;  %v4537_v10 = vpack.c.bf16 %v3587_v1, %v3586_v63  ;;  %v3612_v63 = vld [vmem:[%s6214_s3 + $0x768] sm:$0xff]  ;;  %v3613_v1 = vld [vmem:[%s6214_s3 + $0x770] sm:$0xff] }
 0x1f7   : > { %4522 = vmatpush3.bf16.msra.mxu1 %v4521_v11  ;;  %4488 = vmatprep.subr.bf16.mxu0 %v4487_v12  ;;  %v4505_v11 = vpack.c.bf16 %v3550_v5, %v3549_v3  ;;  %v4539_v12 = vpack.c.bf16 %v3605_v7, %v3604_v6  ;;  %v3630_v5 = vld [vmem:[%s6214_s3 + $0x7e8] sm:$0xff]  ;;  %v3647_v6 = vld [vmem:[%s6214_s3 + $0x870] sm:$0xff]  ;;  %v3648_v7 = vld [vmem:[%s6214_s3 + $0x878] sm:$0xff]  ;;  %v4556_v8 = vpack.c.bf16 %v3613_v1, %v3612_v63 }
 0x1f8   : > { %4235 = vmatprep.subr.mxu1 %v4812_v0  ;;  %v4583_v13 = vpack.c.bf16 %v3648_v7, %v3647_v6  ;;  %v3660_v63 = vld [vmem:[%s6214_s3 + $0x8d8] sm:$0xff]  ;;  %v3668_v1 = vld [vmem:[%s6214_s3 + $0x908] sm:$0xff]  ;;  %v3687_v6 = vld [vmem:[%s6214_s3 + $0x9a0] sm:$0xff]  ;;  %v3129_v7 = vrot.slane %v5333_v28, 7 }
 0x1fa   : > { %4490 = vmatpush3.bf16.msra.mxu0 %v4489_v19  ;;  %v3607_v19 = vld [vmem:[%s6214_s3 + $0x740] sm:$0xff] }
 0x1fb   : > { %4236 = vmatpush3.msk.msra.mxu1 %vm243_vm2, %v3577_v29  ;;  %4492 = vmatprep.subr.bf16.mxu0 %v4491_v23  ;;  %v4509_v23 = vpack.c.bf16 %v3552_v17, %v3551_v15  ;;  %v4543_v25 = vpack.c.bf16 %v3607_v19, %v3606_v18  ;;  %v4567_v29 = vpack.c.bf16 %v3640_v21, %v3639_v20  ;;  %v3632_v15 = vld [vmem:[%s6214_s3 + $0x7f8] sm:$0xff]  ;;  %v3650_v17 = vld [vmem:[%s6214_s3 + $0x888] sm:$0xff]  ;;  %v3617_v21 = vld [vmem:[%s6214_s3 + $0x790] sm:$0xff] }
 0x1fc   : > { %4238 = vmatmul.mubr.msk.f32.vlgmr.msra.gmra.mrb[14].mxu1 %vm1778_vm11, %v2551_v34  ;;  %4524 = vmatprep.subr.bf16.mxu1 %v4523_v30  ;;  %v3623_v30 = vld [vmem:[%s6214_s3 + $0x7b0] sm:$0xff]  ;;  %v3641_v34 = vld [vmem:[%s6214_s3 + $0x840] sm:$0xff]  ;;  %v4585_v19 = vpack.c.bf16 %v3632_v15, %v3631_v14  ;;  %v3616_v20 = vld [vmem:[%s6214_s3 + $0x788] sm:$0xff] }
 0x1fd   : > { %4526 = vmatpush3.bf16.msra.mxu1 %v4525_v33  ;;  %2816 = vmatprep.mubr.f32.mxu1 %v2743_v41  ;;  %v3609_v33 = vld [vmem:[%s6214_s3 + $0x750] sm:$0xff]  ;;  %v4569_v37 = vpack.c.bf16 %v3624_v31, %v3623_v30  ;;  %v3625_v41 = vld [vmem:[%s6214_s3 + $0x7c0] sm:$0xff]  ;;  %v3618_v31 = vld [vmem:[%s6214_s3 + $0x798] sm:$0xff] }
 0x1fe   : > { %4494 = vmatpush3.bf16.msra.mxu0 %v4493_v35  ;;  %4528 = vmatprep.subr.bf16.mxu1 %v4527_v36  ;;  %v3642_v35 = vld [vmem:[%s6214_s3 + $0x848] sm:$0xff]  ;;  %v4545_v36 = vpack.c.bf16 %v3591_v27, %v3590_v26  ;;  %v4547_v43 = vpack.c.bf16 %v3609_v33, %v3608_v32  ;;  %v4573_v52 = vpack.c.bf16 %v3626_v45, %v3625_v41  ;;  %v3651_v26 = vld [vmem:[%s6214_s3 + $0x890] sm:$0xff]  ;;  %v3652_v27 = vld [vmem:[%s6214_s3 + $0x898] sm:$0xff] }
 0x1ff   : > { %4496 = vmatprep.subr.bf16.mxu0 %v4495_v42  ;;  %v2549_v42 = vrot.slane %v5322_v24, 4  ;;  %v4571_v44 = vpack.c.bf16 %v3642_v35, %v3641_v34  ;;  %v3619_v32 = vld [vmem:[%s6214_s3 + $0x7a0] sm:$0xff]  ;;  %v4591_v33 = vpack.c.bf16 %v3652_v27, %v3651_v26  ;;  %v3635_v34 = vld [vmem:[%s6214_s3 + $0x810] sm:$0xff]  ;;  %v3636_v35 = vld [vmem:[%s6214_s3 + $0x818] sm:$0xff] }
 0x200   : > { %v4565_v39 = vpack.c.bf16 %v3619_v32, %v3618_v31  ;;  %v4593_v40 = vpack.c.bf16 %v3636_v35, %v3635_v34  ;;  %v3656_v45 = vld [vmem:[%s6214_s3 + $0x8b8] sm:$0xff]  ;;  %v3688_v14 = vld [vmem:[%s6214_s3 + $0x9a8] sm:$0xff]  ;;  %v3689_v15 = vld [vmem:[%s6214_s3 + $0x9b0] sm:$0xff]  ;;  %v2937_v35 = vrot.slane %v5228_v38, 6 }
 0x201   : > { %4530 = vmatpush3.bf16.msra.mxu1 %v4529_v48  ;;  %v2936_v48 = vrot.slane %v5333_v28, 6  ;;  %v3670_v28 = vld [vmem:[%s6214_s3 + $0x918] sm:$0xff]  ;;  %v3663_v27 = vld [vmem:[%s6214_s3 + $0x8f0] sm:$0xf] }
 0x202   : > { %4498 = vmatpush3.bf16.msra.mxu0 %v4497_v49  ;;  %4532 = vmatprep.subr.bf16.mxu1 %v4531_v50  ;;  %v3643_v49 = vld [vmem:[%s6214_s3 + $0x850] sm:$0xff]  ;;  %v3644_v50 = vld [vmem:[%s6214_s3 + $0x858] sm:$0xff] }
 0x203   : > { %4500 = vmatprep.subr.bf16.mxu0 %v4499_v54  ;;  %v3594_v54 = vld [vmem:[%s6214_s3 + $0x6d8] sm:$0xff]  ;;  %v4575_v56 = vpack.c.bf16 %v3644_v50, %v3643_v49  ;;  %v3693_v34 = vld [vmem:[%s6214_s3 + $0x9d0] sm:$0xff] }
 0x205   : > { %4534 = vmatpush3.bf16.msra.mxu1 %v4533_v60  ;;  %v3646_v60 = vld [vmem:[%s6214_s3 + $0x868] sm:$0xff] }
 0x206   : > { %4502 = vmatpush3.bf16.msra.mxu0 %v4501_v61  ;;  %4536 = vmatprep.subr.bf16.mxu1 %v4535_v62  ;;  %v4553_v61 = vpack.c.bf16 %v3595_v55, %v3594_v54  ;;  %v4577_v62 = vpack.c.bf16 %v3628_v58, %v3627_v57  ;;  %v4579_v3 = vpack.c.bf16 %v3646_v60, %v3645_v59  ;;  %v3658_v54 = vld [vmem:[%s6214_s3 + $0x8c8] sm:$0xff]  ;;  %v3666_v55 = vld [vmem:[%s6214_s3 + $0x8f8] sm:$0xff]  ;;  %v3685_v58 = vld [vmem:[%s6214_s3 + $0x990] sm:$0xff] }
 0x207   : > { %4504 = vmatprep.subr.bf16.mxu0 %v4503_v4  ;;  %v3629_v4 = vld [vmem:[%s6214_s3 + $0x7e0] sm:$0xff]  ;;  %v3684_v57 = vld [vmem:[%s6214_s3 + $0x988] sm:$0xff] }
 0x209   : > { %4538 = vmatpush3.bf16.msra.mxu1 %v4537_v10  ;;  %v4581_v10 = vpack.c.bf16 %v3630_v5, %v3629_v4  ;;  %v4615_v4 = vpack.c.bf16 %v3685_v58, %v3684_v57  ;;  %v3686_v5 = vld [vmem:[%s6214_s3 + $0x998] sm:$0xff] }
 0x20a   : > { %4506 = vmatpush3.bf16.msra.mxu0 %v4505_v11  ;;  %4540 = vmatprep.subr.bf16.mxu1 %v4539_v12  ;;  %v3614_v11 = vld [vmem:[%s6214_s3 + $0x778] sm:$0xff]  ;;  %v3615_v12 = vld [vmem:[%s6214_s3 + $0x780] sm:$0xff] }
 0x20b   : > { %4508 = vmatprep.subr.bf16.mxu0 %v4507_v16  ;;  %v3649_v16 = vld [vmem:[%s6214_s3 + $0x880] sm:$0xff]  ;;  %v4559_v18 = vpack.c.bf16 %v3615_v12, %v3614_v11  ;;  %v4619_v11 = vpack.c.bf16 %v3687_v6, %v3686_v5  ;;  %v3662_v12 = vld [vmem:[%s6214_s3 + $0x8e8] sm:$0xff] }
 0x20d   : > { %4542 = vmatpush3.bf16.msra.mxu1 %v4541_v22  ;;  %v4587_v22 = vpack.c.bf16 %v3650_v17, %v3649_v16 }
 0x20e   : > { %4510 = vmatpush3.bf16.msra.mxu0 %v4509_v23  ;;  %4544 = vmatprep.subr.bf16.mxu1 %v4543_v25  ;;  %v3633_v23 = vld [vmem:[%s6214_s3 + $0x800] sm:$0xff]  ;;  %v3634_v25 = vld [vmem:[%s6214_s3 + $0x808] sm:$0xff] }
 0x20f   : > { %4568 = vmatprep.subr.bf16.mxu0 %v4567_v29  ;;  %v4562_v29 = vpack.c.bf16 %v3617_v21, %v3616_v20  ;;  %v4589_v30 = vpack.c.bf16 %v3634_v25, %v3633_v23  ;;  %v3673_v20 = vld [vmem:[%s6214_s3 + $0x930] sm:$0xff]  ;;  %v3698_v21 = vld [vmem:[%s6214_s3 + $0x9f8] sm:$0xff]  ;;  %v3691_v25 = vld [vmem:[%s6214_s3 + $0x9c0] sm:$0xff] }
 0x210   : > { %v3690_v23 = vld [vmem:[%s6214_s3 + $0x9b8] sm:$0xff] }
 0x211   : > { %4546 = vmatpush3.bf16.msra.mxu1 %v4545_v36  ;;  %2624 = vmatmul.mubr.f32.vlgmr.msra.gmra.mrb[12].mxu0 %v2549_v42  ;;  %v3653_v36 = vld [vmem:[%s6214_s3 + $0x8a0] sm:$0xff]  ;;  %v4627_v32 = vpack.c.bf16 %v3691_v25, %v3690_v23 }
 0x212   : > { %4570 = vmatpush3.bf16.msra.mxu0 %v4569_v37  ;;  %3009 = vmatprep.mubr.f32.mxu0 %v2936_v48  ;;  %v3654_v37 = vld [vmem:[%s6214_s3 + $0x8a8] sm:$0xff]  ;;  %v3637_v42 = vld [vmem:[%s6214_s3 + $0x820] sm:$0xff] }
 0x213   : > { %4548 = vmatprep.subr.bf16.mxu1 %v4547_v43  ;;  %4572 = vmatprep.subr.bf16.mxu0 %v4571_v44  ;;  %v4595_v41 = vpack.c.bf16 %v3654_v37, %v3653_v36  ;;  %v3638_v43 = vld [vmem:[%s6214_s3 + $0x828] sm:$0xff]  ;;  %v3655_v44 = vld [vmem:[%s6214_s3 + $0x8b0] sm:$0xff] }
 0x214   : > { %v3620_v48 = vld [vmem:[%s6214_s3 + $0x7a8] sm:$0xf]  ;;  %v4597_v49 = vpack.c.bf16 %v3638_v43, %v3637_v42  ;;  %v4600_v50 = vpack.c.bf16 %v3656_v45, %v3655_v44  ;;  %v3701_v37 = vld [vmem:[%s6214_s3 + $0xa10] sm:$0xff]  ;;  %v3694_v44 = vld [vmem:[%s6214_s3 + $0x9d8] sm:$0xff] }
 0x215   : > { %4550 = vmatpush3.bf16.msra.mxu1 %v4549_v51  ;;  %v3657_v51 = vld [vmem:[%s6214_s3 + $0x8c0] sm:$0xff]  ;;  %v3700_v36 = vld [vmem:[%s6214_s3 + $0xa08] sm:$0xff]  ;;  %v3677_v42 = vld [vmem:[%s6214_s3 + $0x950] sm:$0xff] }
 0x216   : > { %4574 = vmatpush3.bf16.msra.mxu0 %v4573_v52  ;;  %4552 = vmatprep.subr.bf16.mxu1 %v4551_v53  ;;  %v2744_v52 = vrot.slane %v5228_v38, 5  ;;  %v4611_v53 = vpack.c.bf16 %v3683_v47, %v3682_v46  ;;  %v4603_v59 = vpack.c.bf16 %v3658_v54, %v3657_v51  ;;  %v4647_v43 = vpack.c.bf16 %v3701_v37, %v3700_v36  ;;  %v3695_v45 = vld [vmem:[%s6214_s3 + $0x9e0] sm:$0xff]  ;;  %v3702_v46 = vld [vmem:[%s6214_s3 + $0xa18] sm:$0xff]  ;;  %v3697_v54 = vld [vmem:[%s6214_s3 + $0x9f0] sm:$0xff] }
 0x217   : > { %4576 = vmatprep.subr.bf16.mxu0 %v4575_v56  ;;  %v3667_v56 = vld [vmem:[%s6214_s3 + $0x900] sm:$0xff] }
 0x218   : > { %v4613_v60 = vpack.c.bf16 %v3667_v56, %v3666_v55  ;;  %v3703_v47 = vld [vmem:[%s6214_s3 + $0xa20] sm:$0xff]  ;;  %v3704_v55 = vld [vmem:[%s6214_s3 + $0xa28] sm:$0xff]  ;;  %v3705_v56 = vld [vmem:[%s6214_s3 + $0xa30] sm:$0xff] }
 0x219   : > { %4554 = vmatpush3.bf16.msra.mxu1 %v4553_v61  ;;  %v3659_v61 = vld [vmem:[%s6214_s3 + $0x8d0] sm:$0xff]  ;;  %v3679_v51 = vld [vmem:[%s6214_s3 + $0x960] sm:$0xff] }
 0x21a   : > { %4578 = vmatpush3.bf16.msra.mxu0 %v4577_v62  ;;  %4555 = vmatprep.subr.bf16.mxu1 %v4823_v2  ;;  %v2935_v62 = vrot.slane %v5322_v24, 6 }
 0x21b   : > { %4580 = vmatprep.subr.bf16.mxu0 %v4579_v3  ;;  %v3669_v3 = vld [vmem:[%s6214_s3 + $0x910] sm:$0xff] }
 0x21c   : > { %2817 = vmatmul.mubr.f32.vlgmr.msra.gmra.mrb[18].mxu1 %v2742_v9  ;;  %v4617_v9 = vpack.c.bf16 %v3669_v3, %v3668_v1  ;;  %v3128_v1 = vrot.slane %v5322_v24, 7  ;;  %v3130_v3 = vrot.slane %v5228_v38, 7 }
 0x21d   : > { %4557 = vmatpush3.bf16.msra.mxu1 %v4556_v8  ;;  %4258 = vmatprep.mubr.msk.f32.mxu1 %vm4813_vm0, %v4812_v0  ;;  %v4606_v8 = vpack.c.bf16 %v3660_v63, %v3659_v61  ;;  %v4653_v61 = vpack.c.bf16 %v3705_v56, %v3704_v55  ;;  %v3706_v63 = vld [vmem:[%s6214_s3 + $0xa38] sm:$0xf] }
 0x21e   : > { %4582 = vmatpush3.bf16.msra.mxu0 %v4581_v10  ;;  %4558 = vmatprep.subr.bf16.mxu1 %v4823_v2  ;;  %v3661_v10 = vld [vmem:[%s6214_s3 + $0x8e0] sm:$0xff] }
 0x21f   : > { %4584 = vmatprep.subr.bf16.mxu0 %v4583_v13  ;;  %v3671_v13 = vld [vmem:[%s6214_s3 + $0x920] sm:$0xff]  ;;  %v4609_v16 = vpack.c.bf16 %v3662_v12, %v3661_v10 }
 0x220   : > { %v4621_v17 = vpack.c.bf16 %v3671_v13, %v3670_v28 }
 0x221   : > { %4560 = vmatpush3.bf16.msra.mxu1 %v4559_v18  ;;  %v4623_v18 = vpack.c.bf16 %v3689_v15, %v3688_v14 }
 0x222   : > { %4586 = vmatpush3.bf16.msra.mxu0 %v4585_v19  ;;  %4561 = vmatprep.subr.bf16.mxu1 %v4823_v2  ;;  %v3672_v19 = vld [vmem:[%s6214_s3 + $0x928] sm:$0xff] }
 0x223   : > { %4588 = vmatprep.subr.bf16.mxu0 %v4587_v22  ;;  %v3699_v22 = vld [vmem:[%s6214_s3 + $0xa00] sm:$0xff]  ;;  %v4625_v26 = vpack.c.bf16 %v3673_v20, %v3672_v19 }
 0x224   : > { %v4644_v31 = vpack.c.bf16 %v3699_v22, %v3698_v21 }
 0x225   : > { %4563 = vmatpush3.bf16.msra.mxu1 %v4562_v29  ;;  %v3674_v29 = vld [vmem:[%s6214_s3 + $0x938] sm:$0xff] }
 0x226   : > { %4590 = vmatpush3.bf16.msra.mxu0 %v4589_v30  ;;  %4564 = vmatprep.subr.bf16.mxu1 %v4823_v2  ;;  %v3675_v30 = vld [vmem:[%s6214_s3 + $0x940] sm:$0xff] }
 0x227   : > { %4592 = vmatprep.subr.bf16.mxu0 %v4591_v33  ;;  %v3692_v33 = vld [vmem:[%s6214_s3 + $0x9c8] sm:$0xff] }
 0x229   : > { %4566 = vmatpush3.bf16.msra.mxu1 %v4565_v39  ;;  %v4629_v39 = vpack.c.bf16 %v3675_v30, %v3674_v29 }
 0x22a   : > { %4594 = vmatpush3.bf16.msra.mxu0 %v4593_v40  ;;  %4256 = vmatprep.subr.mxu1 %v4812_v0  ;;  %v4631_v40 = vpack.c.bf16 %v3693_v34, %v3692_v33 }
 0x22b   : > { %4596 = vmatprep.subr.bf16.mxu0 %v4595_v41  ;;  %v3676_v41 = vld [vmem:[%s6214_s3 + $0x948] sm:$0xff] }
 0x22d   : > { %4257 = vmatpush3.msk.msra.mxu1 %vm243_vm2, %v3620_v48  ;;  %v4633_v48 = vpack.c.bf16 %v3677_v42, %v3676_v41 }
 0x22e   : > { %4259 = vmatmul.mubr.msk.f32.vlgmr.msra.gmra.mrb[14].mxu1 %vm1778_vm11, %v2744_v52  ;;  %4599 = vmatprep.subr.bf16.mxu1 %v4823_v2  ;;  %v4650_v52 = vpack.c.bf16 %v3703_v47, %v3702_v46 }
 0x22f   : > { %4598 = vmatpush3.bf16.msra.mxu0 %v4597_v49  ;;  %4601 = vmatpush3.bf16.msra.mxu1 %v4600_v50  ;;  %v4635_v49 = vpack.c.bf16 %v3695_v45, %v3694_v44  ;;  %v3678_v50 = vld [vmem:[%s6214_s3 + $0x958] sm:$0xff] }
 0x230   : > { %4602 = vmatprep.subr.bf16.mxu1 %v4823_v2  ;;  %4612 = vmatprep.subr.bf16.mxu0 %v4611_v53  ;;  %v3696_v53 = vld [vmem:[%s6214_s3 + $0x9e8] sm:$0xff]  ;;  %v4637_v57 = vpack.c.bf16 %v3679_v51, %v3678_v50 }
 0x231   : > { %4279 = vmatprep.mubr.msk.f32.mxu1 %vm4813_vm0, %v4812_v0  ;;  %v4639_v58 = vpack.c.bf16 %v3697_v54, %v3696_v53 }
 0x232   : > { %3010 = vmatmul.mubr.f32.vlgmr.msra.gmra.mrb[14].mxu0 %v2935_v62 }
 0x233   : > { %4604 = vmatpush3.bf16.msra.mxu1 %v4603_v59  ;;  %4614 = vmatpush3.bf16.msra.mxu0 %v4613_v60  ;;  %v3680_v59 = vld [vmem:[%s6214_s3 + $0x968] sm:$0xff]  ;;  %v3681_v60 = vld [vmem:[%s6214_s3 + $0x970] sm:$0xff] }
 0x234   : > { %3202 = vmatprep.mubr.f32.mxu0 %v3129_v7  ;;  %4605 = vmatprep.subr.bf16.mxu1 %v4823_v2  ;;  %v4641_v62 = vpack.c.bf16 %v3681_v60, %v3680_v59 }
 0x235   : > { %4616 = vmatprep.subr.bf16.mxu0 %v4615_v4  ;;  %v1736_v4 = vld [vmem:[%s6215_s4] sm:$0x1] }
 0x237   : > { %4607 = vmatpush3.bf16.msra.mxu1 %v4606_v8  ;;  %4618 = vmatpush3.bf16.msra.mxu0 %v4617_v9 }
 0x238   : > { %4608 = vmatprep.subr.bf16.mxu1 %v4823_v2  ;;  %4620 = vmatprep.subr.bf16.mxu0 %v4619_v11 }
 0x23b   : > { %4610 = vmatpush3.bf16.msra.mxu1 %v4609_v16  ;;  %4622 = vmatpush3.bf16.msra.mxu0 %v4621_v17 }
 0x23c   : > { %4277 = vmatprep.subr.mxu1 %v4812_v0  ;;  %4624 = vmatprep.subr.bf16.mxu0 %v4623_v18 }
 0x23f   : > { %4278 = vmatpush3.msk.msra.mxu1 %vm243_vm2, %v3663_v27  ;;  %4626 = vmatpush3.bf16.msra.mxu0 %v4625_v26 }
 0x240   : > { %4280 = vmatmul.mubr.msk.f32.vlgmr.msra.gmra.mrb[14].mxu1 %vm1778_vm11, %v2937_v35  ;;  %4643 = vmatprep.subr.bf16.mxu1 %v4823_v2 }
 0x241   : > { %4645 = vmatpush3.bf16.msra.mxu1 %v4644_v31  ;;  %4628 = vmatprep.subr.bf16.mxu0 %v4627_v32 }
 0x242   : > { %4646 = vmatprep.subr.bf16.mxu1 %v4823_v2  ;;  %4300 = vmatprep.mubr.msk.f32.mxu1 %vm4813_vm0, %v4812_v0 }
 0x243   : > { %4630 = vmatpush3.bf16.msra.mxu0 %v4629_v39 }
 0x244   : > { %4632 = vmatprep.subr.bf16.mxu0 %v4631_v40 }
 0x245   : > { %4648 = vmatpush3.bf16.msra.mxu1 %v4647_v43 }
 0x246   : > { %4649 = vmatprep.subr.bf16.mxu1 %v4823_v2 }
 0x247   : > { %4634 = vmatpush3.bf16.msra.mxu0 %v4633_v48 }
 0x248   : > { %4636 = vmatprep.subr.bf16.mxu0 %v4635_v49 }
 0x249   : > { %4651 = vmatpush3.bf16.msra.mxu1 %v4650_v52 }
 0x24a   : > { %4652 = vmatprep.subr.bf16.mxu1 %v4823_v2 }
 0x24b   : > { %4638 = vmatpush3.bf16.msra.mxu0 %v4637_v57 }
 0x24c   : > { %4640 = vmatprep.subr.bf16.mxu0 %v4639_v58 }
 0x24d   : > { %4654 = vmatpush3.bf16.msra.mxu1 %v4653_v61 }
 0x24e   : > { %4298 = vmatprep.subr.mxu1 %v4812_v0 }
 0x24f   : > { %4642 = vmatpush3.bf16.msra.mxu0 %v4641_v62 }
 0x251   : > { %4299 = vmatpush3.msk.msra.mxu1 %vm243_vm2, %v3706_v63 }
 0x252   : > { %3203 = vmatmul.mubr.f32.vlgmr.msra.gmra.mrb[16].mxu0 %v3128_v1  ;;  %4301 = vmatmul.mubr.msk.f32.vlgmr.msra.gmra.mrb[14].mxu1 %vm1778_vm11, %v3130_v3 }
 0x284   : > { %v3762_v2 = vpop.f32.mrb[6].mxu0 }
 0x285   : > { %v3763_v0 = vpop.f32.mrb[7].mxu0 }
 0x286   : > { %v3764_v5 = vadd.f32 %v3763_v0, %v3762_v2  ;;  %v3807_v6 = vpop.f32.mrb[16].mxu1 }
 0x287   : > { %v3808_v7 = vpop.f32.mrb[17].mxu1 }
 0x288   : > { %v4655_v8 = vadd.f32 %v3764_v5, %v1736_v4  ;;  %v3809_v9 = vadd.f32 %v3808_v7, %v3807_v6 }
 0x28a   : > { %v4656_v10 = vadd.f32 %v4655_v8, %v3809_v9 }
 0x2a4   : > { %v3852_v24 = vpop.f32.mrb[8].mxu0 }
 0x2a5   : > { %v3853_v11 = vpop.f32.mrb[9].mxu0 }
 0x2a6   : > { %v3854_v38 = vadd.f32 %v3853_v11, %v3852_v24 }
 0x2a8   : > { %v4657_v12 = vadd.f32 %v4656_v10, %v3854_v38 }
 0x2c4   : > { %v3897_v28 = vpop.f32.mrb[10].mxu0 }
 0x2c5   : > { %v3898_v13 = vpop.f32.mrb[11].mxu0 }
 0x2c6   : > { %v3899_v14 = vadd.f32 %v3898_v13, %v3897_v28 }
 0x2c8   : > { %v4658_v15 = vadd.f32 %v4657_v12, %v3899_v14 }
 0x2e4   : > { %v3942_v16 = vpop.f32.mrb[12].mxu0 }
 0x2e5   : > { %v3943_v17 = vpop.f32.mrb[13].mxu0 }
 0x2e6   : > { %v3944_v18 = vadd.f32 %v3943_v17, %v3942_v16 }
 0x2e8   : > { %v4659_v19 = vadd.f32 %v4658_v15, %v3944_v18 }
 0x2ef   : > { %v3987_v20 = vpop.f32.mrb[18].mxu1 }
 0x2f0   : > { %v3988_v21 = vpop.f32.mrb[19].mxu1 }
 0x2f1   : > { %v3989_v22 = vadd.f32 %v3988_v21, %v3987_v20 }
 0x2f3   : > { %v4660_v23 = vadd.f32 %v4659_v19, %v3989_v22 }
 0x305   : > { %v4032_v25 = vpop.f32.mrb[14].mxu0 }
 0x306   : > { %v4033_v26 = vpop.f32.mrb[15].mxu0 }
 0x307   : > { %v4034_v27 = vadd.f32 %v4033_v26, %v4032_v25 }
 0x309   : > { %v4661_v29 = vadd.f32 %v4660_v23, %v4034_v27 }
 0x325   : > { %v4077_v30 = vpop.f32.mrb[16].mxu0  ;;  %v3274_v31 = vpop.f32.mrb[14].mxu1 }
 0x326   : > { %v4078_v32 = vpop.f32.mrb[17].mxu0  ;;  %v4302_v33 = vpop.f32.mrb[15].mxu1 }
 0x327   : > { %v4079_v34 = vadd.f32 %v4078_v32, %v4077_v30 }
 0x329   : > { %v4662_v35 = vadd.f32 %v4661_v29, %v4079_v34 }
 0x32b   : > { %v4663_v36 = vadd.f32 %v4662_v35, %v3274_v31 }
 0x32d   : > { %3279 = vst [vmem:[%s216_s10] sm:$0x1] %v4663_v36 }
 0x32e   : > { %4761 = shalt.err (!%p4758_p3)
}
 0x32f   : > { %s4762_s25 = scalar_lea.hbm %s6169_s14, 16  ;;  %s4766_s6 = scalar_lea.hbm %s6216_s5, 32 }
 0x330   : > { %p4763_p4 = scmp.ne.s32.totalorder %s6169_s14, %s4762_s25  ;;  %p4767_p9 = scmp.lt.u32.totalorder %s6169_s14, %s6216_s5 }
 0x331   : > { %p4768_p10 = scmp.lt.u32.totalorder %s4766_s6, %s4762_s25  ;;  %p4770_p12 = scmp.lt.u32.totalorder %s4762_s25, %s6169_s14 }
 0x332   : > { %p4764_p7 = pnand %p4763_p4, %p4893_p5 }
 0x333   : > { %p4769_p11 = por %p4768_p10, %p4767_p9 }
 0x334   : > { %p4765_p8 = pneg %p4764_p7 }
 0x335   : > { %p4771_p13 = por %p4770_p12, %p4769_p11 }
 0x337   : > { %p4772_p0 = pnand %p4771_p13, %p4765_p8 }
 0x339   : > { %4775 = shalt.err (!%p4772_p0)
}
 0x33a   : > { %4695 = dma.vmem_to_hbm [thread:$0]  (%p4893_p5), %s6171_s11, 16, %s6169_s14, %s3281_s15  }
 0x33b PF: > { %p4701_p1 = scmp.ge.s32.totalorder %s4810_s21, 2  ;;  %s3305_s9 = sand.u32 1, %s4798_s18  }
 0x33c   : > { %s3306_s10 = scalar_lea.sflag [#allocation3], %s3305_s9 }
 0x33d   : > { %p4698_p2 = pnand %p4701_p1, %p4897_p6 }
 0x33f   : > { %4793 = dma.done.wait (!%p4698_p2), %s3306_s10, 16  }
 0x340   : > { %4795 = vsyncadd (!%p4698_p2), %s3306_s10, 4294967280  ;;  %p15_p3 = scmp.ge.s32.totalorder %s4880_s24, 4   ;;  %s6219_s18 = smov %s4802_s19 }
 0x341   : > { %s6220_s19 = smov %s4806_s20  ;;  %s6221_s20 = smov %s4891_s27 }
 0x342   : > { %s6222_s21 = smov %s4880_s24  ;;  %17 = sbr.rel (!%p15_p3) target bundleno = 3 (0x3), region = 90 }
 0x349   :  { %3310 = vsyncpa [#allocation3], 1 }
 0x34a   :  { %3312 = vsyncpa [#allocation3 + $0x1], 1 }

</bundles_post_ra>
